<compile_context>
chip_gen: v6e
topology: v6e:2x2x1
jax: 0.10.0
libtpu: 0.0.40
codegen_flags: <defaults>
</compile_context>

<pallas_src>
import functools

import jax
import jax.numpy as jnp
from jax.experimental import pallas as pl
from jax.experimental.pallas import tpu as pltpu

LN_EPS = 1e-5  # PyTorch nn.LayerNorm default


def _layernorm(x, gamma, beta):
    # One-pass statistics: var = E[x^2] - mean^2 (avoids materializing (x-mu) twice).
    mu = jnp.mean(x, axis=-1, keepdims=True)
    ms = jnp.mean(x * x, axis=-1, keepdims=True)
    var = ms - mu * mu
    return (x - mu) * jax.lax.rsqrt(var + LN_EPS) * gamma + beta


def _gelu_tanh(x):
    # tanh-approximate GELU; tanh routes to the EUP (otherwise idle slot).
    c = 0.7978845608028654  # sqrt(2/pi)
    return 0.5 * x * (1.0 + jnp.tanh(c * (x + 0.044715 * x * x * x)))


def transformer_block_kernel(
    x_ref,
    ln1_g_ref, ln1_b_ref,
    w_qkv_ref, b_qkv_ref,
    w_out_ref, b_out_ref,
    ln2_g_ref, ln2_b_ref,
    w1_ref, b1_ref,
    w2_ref, b2_ref,
    o_ref,
    *, heads, dim_head,
):
    bt, n, d = x_ref.shape
    rows = bt * n
    inner = heads * dim_head

    # (bt, N, D) -> (bt*N, D): merges leading (sublane-major) dims, no lane relayout.
    x = x_ref[...].reshape(rows, d).astype(jnp.float32)

    # ---------------- attention branch: x + Attention(LayerNorm(x)) ----------------
    xn = _layernorm(x, ln1_g_ref[...], ln1_b_ref[...])
    # softmax scale is pre-folded into the q columns of w_qkv / b_qkv on the host.
    qkv = jnp.dot(xn.astype(jnp.bfloat16), w_qkv_ref[...],
                  preferred_element_type=jnp.float32) + b_qkv_ref[...]
    q = qkv[:, 0 * inner:1 * inner].astype(jnp.bfloat16)   # 128-lane-aligned slices
    k = qkv[:, 1 * inner:2 * inner].astype(jnp.bfloat16)
    v = qkv[:, 2 * inner:3 * inner].astype(jnp.bfloat16)
    w_out = w_out_ref[...]                                  # bf16 (inner, D)

    # Per-(batch, head) attention; each head is accumulated straight into the
    # output projection via the matching 32-row slice of W_out -> no lane concat.
    batch_rows = []
    for b in range(bt):                                     # static unroll
        r0, r1 = b * n, (b + 1) * n
        acc_b = jnp.zeros((n, d), jnp.float32)
        for h in range(heads):                              # static unroll
            lo, hi = h * dim_head, (h + 1) * dim_head
            qh, kh, vh = q[r0:r1, lo:hi], k[r0:r1, lo:hi], v[r0:r1, lo:hi]
            dots = jnp.dot(qh, kh.T, preferred_element_type=jnp.float32)  # (N, N)
            dots = dots - jnp.max(dots, axis=-1, keepdims=True)
            e = jnp.exp(dots)
            attn = e * pl.reciprocal(jnp.sum(e, axis=-1, keepdims=True), approx=True)
            oh = jnp.dot(attn.astype(jnp.bfloat16), vh,
                         preferred_element_type=jnp.float32)              # (N, dh)
            acc_b = acc_b + jnp.dot(oh.astype(jnp.bfloat16), w_out[lo:hi, :],
                                    preferred_element_type=jnp.float32)   # (N, D)
        batch_rows.append(acc_b)
    attn_out = jnp.concatenate(batch_rows, axis=0) + b_out_ref[...]       # sublane concat
    x1 = x + attn_out                                        # residual 1

    # ---------------- feed-forward branch: x1 + FF(LayerNorm(x1)) ----------------
    x1n = _layernorm(x1, ln2_g_ref[...], ln2_b_ref[...])
    h1 = jnp.dot(x1n.astype(jnp.bfloat16), w1_ref[...],
                 preferred_element_type=jnp.float32) + b1_ref[...]
    h1 = _gelu_tanh(h1)
    ff_out = jnp.dot(h1.astype(jnp.bfloat16), w2_ref[...],
                     preferred_element_type=jnp.float32) + b2_ref[...]

    o_ref[...] = (x1 + ff_out).reshape(bt, n, d).astype(o_ref.dtype)      # residual 2


def _prepare_params(p, heads, dim_head):
    """Host-side prep: fold softmax scale into the q-columns of w_qkv/b_qkv and
    cast matmul weights to bf16 (halves weight DMA bytes; kernel accumulates f32).
    LN params and biases stay f32 (added to f32 accumulators)."""
    inner = heads * dim_head
    scale = dim_head ** (-0.5)
    col_scale = jnp.concatenate([jnp.full((inner,), scale, jnp.float32),
                                 jnp.ones((2 * inner,), jnp.float32)])[None, :]
    w_qkv = p['w_qkv'] * col_scale
    b_qkv = p['b_qkv'] * col_scale
    bf16 = lambda a: a.astype(jnp.bfloat16)
    return [
        p['ln1_g'], p['ln1_b'],
        bf16(w_qkv), b_qkv,
        bf16(p['w_out']), p['b_out'],
        p['ln2_g'], p['ln2_b'],
        bf16(p['w1']), p['b1'],
        bf16(p['w2']), p['b2'],
    ]


def make_transformer_block(B, N, D, hidden_dim, heads, dim_head, batch_tile=None):
    # batch_tile=None folds the full batch into ONE grid step: fewer per-step
    # overheads, fatter (B*N, D) matmul rows, weights staged once (best for
    # v5e/v6e's single TensorCore). For v7x (2 TCs) with larger workloads pass
    # batch_tile=B//2 to keep >=2 'parallel' grid steps so both cores are used.
    bt = B if batch_tile is None else batch_tile
    assert B % bt == 0
    inner = heads * dim_head
    kernel = functools.partial(transformer_block_kernel, heads=heads, dim_head=dim_head)

    rows = B * N
    flops = (2 * rows * (D * 3 * inner + inner * D + D * hidden_dim + hidden_dim * D)
             + 2 * B * heads * (2 * N * N * dim_head))
    transcendentals = B * heads * N * N + rows * hidden_dim + 4 * rows  # exp + tanh + rsqrt/recip

    def call(x, param_list):
        bytes_accessed = int(2 * x.size * x.dtype.itemsize
                             + sum(int(a.size) * a.dtype.itemsize for a in param_list))
        in_specs = [pl.BlockSpec((bt, N, D), lambda i: (i, 0, 0))]
        for arr in param_list:
            # all params are small 2D arrays; whole array = one resident block
            in_specs.append(pl.BlockSpec(arr.shape, lambda i: (0, 0)))
        return pl.pallas_call(
            kernel,
            out_shape=jax.ShapeDtypeStruct((B, N, D), x.dtype),
            grid=(B // bt,),
            in_specs=in_specs,
            out_specs=pl.BlockSpec((bt, N, D), lambda i: (i, 0, 0)),
            compiler_params=pltpu.CompilerParams(
                dimension_semantics=("parallel",),
                vmem_limit_bytes=8 * 1024 * 1024),
            cost_estimate=pl.CostEstimate(
                flops=int(flops),
                transcendentals=int(transcendentals),
                bytes_accessed=bytes_accessed),
        )(x, *param_list)

    return call


def make_params(key, input_dim, output_dim, hidden_dim, heads, dim_head):
    inner = heads * dim_head
    ks = jax.random.split(key, 12)

    def rnd(k, shape, s):
        return (s * jax.random.normal(k, shape)).astype(jnp.float32)

    return dict(
        ln1_g=1.0 + rnd(ks[0], (1, input_dim), 0.1),
        ln1_b=rnd(ks[1], (1, input_dim), 0.1),
        w_qkv=rnd(ks[2], (input_dim, 3 * inner), 0.02),
        b_qkv=rnd(ks[3], (1, 3 * inner), 0.1),
        w_out=rnd(ks[4], (inner, output_dim), 0.02),
        b_out=rnd(ks[5], (1, output_dim), 0.1),
        ln2_g=1.0 + rnd(ks[6], (1, output_dim), 0.1),
        ln2_b=rnd(ks[7], (1, output_dim), 0.1),
        w1=rnd(ks[8], (output_dim, hidden_dim), 0.02),
        b1=rnd(ks[9], (1, hidden_dim), 0.1),
        w2=rnd(ks[10], (hidden_dim, output_dim), 0.02),
        b2=rnd(ks[11], (1, output_dim), 0.1),
    )


def reference(x, p, heads, dim_head):
    # Pure-JAX f32 reference mirroring the PyTorch forward exactly (eval mode).
    def ln(t, g, b):
        mu = t.mean(-1, keepdims=True)
        var = ((t - mu) ** 2).mean(-1, keepdims=True)
        return (t - mu) / jnp.sqrt(var + LN_EPS) * g + b

    B, N, D = x.shape
    inner = heads * dim_head
    scale = dim_head ** (-0.5)

    xn = ln(x, p['ln1_g'][0], p['ln1_b'][0])
    qkv = xn @ p['w_qkv'] + p['b_qkv'][0]
    q, k, v = jnp.split(qkv, 3, axis=-1)
    r = lambda t: t.reshape(B, N, heads, dim_head).transpose(0, 2, 1, 3)
    q, k, v = r(q), r(k), r(v)
    dots = jnp.einsum('bhnd,bhmd->bhnm', q, k) * scale
    attn = jax.nn.softmax(dots, axis=-1)
    out = jnp.einsum('bhnm,bhmd->bhnd', attn, v).transpose(0, 2, 1, 3).reshape(B, N, inner)
    x1 = x + (out @ p['w_out'] + p['b_out'][0])

    x1n = ln(x1, p['ln2_g'][0], p['ln2_b'][0])
    h = x1n @ p['w1'] + p['b1'][0]
    h = 0.5 * h * (1.0 + jax.lax.erf(h * (2.0 ** -0.5)))   # exact GELU (nn.GELU default)
    return x1 + (h @ p['w2'] + p['b2'][0])


if __name__ == "__main__":
    # TransformerBlock(input_dim=128, output_dim=128, hidden_dim=256, heads=4, dim_head=32)
    B, N, D = 2, 16, 128
    hidden_dim, heads, dim_head = 256, 4, 32

    key = jax.random.PRNGKey(0)
    kx, kp = jax.random.split(key)
    x = jax.random.normal(kx, (B, N, D), dtype=jnp.float32)
    params = make_params(kp, D, D, hidden_dim, heads, dim_head)
    param_list = _prepare_params(params, heads, dim_head)

    y_ref = reference(x, params, heads, dim_head)

    # Default: batch fully folded into one grid step (v5e/v6e-optimal).
    block = make_transformer_block(B, N, D, hidden_dim, heads, dim_head)
    y = jax.block_until_ready(block(x, param_list))
    assert y.shape == (B, N, D)
    # bf16 MXU inputs + tanh-GELU + approx reciprocal => compare at 1e-2 vs exact f32 ref.
    assert jnp.allclose(y, y_ref, atol=1e-2, rtol=1e-2), \
        f"max abs diff {jnp.max(jnp.abs(y - y_ref))}"

    # v7x-style variant: 2 parallel grid steps (one batch per TensorCore).
    block2 = make_transformer_block(B, N, D, hidden_dim, heads, dim_head, batch_tile=1)
    y2 = jax.block_until_ready(block2(x, param_list))
    assert jnp.allclose(y2, y_ref, atol=1e-2, rtol=1e-2), \
        f"max abs diff {jnp.max(jnp.abs(y2 - y_ref))}"

    print("KERNEL_OK")
</pallas_src>

<mosaic_0001>
module attributes {stable_mosaic.version = 11 : i64} {
  func.func @transformer_block_kernel(%arg0: i32, %arg1: memref<2x16x128xf32, #tpu.memory_space<vmem>>, %arg2: memref<1x128xf32, #tpu.memory_space<vmem>>, %arg3: memref<1x128xf32, #tpu.memory_space<vmem>>, %arg4: memref<128x384xbf16, #tpu.memory_space<vmem>>, %arg5: memref<1x384xf32, #tpu.memory_space<vmem>>, %arg6: memref<128x128xbf16, #tpu.memory_space<vmem>>, %arg7: memref<1x128xf32, #tpu.memory_space<vmem>>, %arg8: memref<1x128xf32, #tpu.memory_space<vmem>>, %arg9: memref<1x128xf32, #tpu.memory_space<vmem>>, %arg10: memref<128x256xbf16, #tpu.memory_space<vmem>>, %arg11: memref<1x256xf32, #tpu.memory_space<vmem>>, %arg12: memref<256x128xbf16, #tpu.memory_space<vmem>>, %arg13: memref<1x128xf32, #tpu.memory_space<vmem>>, %arg14: memref<2x16x128xf32, #tpu.memory_space<vmem>>) attributes {dimension_semantics = [#tpu.dimension_semantics<parallel>], iteration_bounds = array<i64: 1>, scalar_prefetch = 0 : i64, scratch_operands = 0 : i64, tpu.core_type = #tpu.core_type<tc>, window_params = [{transform_indices = @transform_0, window_bounds = array<i64: 2, 16, 128>}, {pipeline_mode = #tpu.pipeline_mode<synchronous>, transform_indices = @transform_1, window_bounds = array<i64: 1, 128>}, {pipeline_mode = #tpu.pipeline_mode<synchronous>, transform_indices = @transform_2, window_bounds = array<i64: 1, 128>}, {pipeline_mode = #tpu.pipeline_mode<synchronous>, transform_indices = @transform_3, window_bounds = array<i64: 128, 384>}, {pipeline_mode = #tpu.pipeline_mode<synchronous>, transform_indices = @transform_4, window_bounds = array<i64: 1, 384>}, {pipeline_mode = #tpu.pipeline_mode<synchronous>, transform_indices = @transform_5, window_bounds = array<i64: 128, 128>}, {pipeline_mode = #tpu.pipeline_mode<synchronous>, transform_indices = @transform_6, window_bounds = array<i64: 1, 128>}, {pipeline_mode = #tpu.pipeline_mode<synchronous>, transform_indices = @transform_7, window_bounds = array<i64: 1, 128>}, {pipeline_mode = #tpu.pipeline_mode<synchronous>, transform_indices = @transform_8, window_bounds = array<i64: 1, 128>}, {pipeline_mode = #tpu.pipeline_mode<synchronous>, transform_indices = @transform_9, window_bounds = array<i64: 128, 256>}, {pipeline_mode = #tpu.pipeline_mode<synchronous>, transform_indices = @transform_10, window_bounds = array<i64: 1, 256>}, {pipeline_mode = #tpu.pipeline_mode<synchronous>, transform_indices = @transform_11, window_bounds = array<i64: 256, 128>}, {pipeline_mode = #tpu.pipeline_mode<synchronous>, transform_indices = @transform_12, window_bounds = array<i64: 1, 128>}, {transform_indices = @transform_13, window_bounds = array<i64: 2, 16, 128>}]} {
    %c0 = arith.constant 0 : index
    %c0_0 = arith.constant 0 : index
    %c0_1 = arith.constant 0 : index
    %0 = vector.load %arg1[%c0, %c0_0, %c0_1] : memref<2x16x128xf32, #tpu.memory_space<vmem>>, vector<2x16x128xf32>
    %1 = vector.shape_cast %0 : vector<2x16x128xf32> to vector<32x128xf32>
    %c0_2 = arith.constant 0 : index
    %c0_3 = arith.constant 0 : index
    %2 = vector.load %arg2[%c0_2, %c0_3] : memref<1x128xf32, #tpu.memory_space<vmem>>, vector<1x128xf32>
    %c0_4 = arith.constant 0 : index
    %c0_5 = arith.constant 0 : index
    %3 = vector.load %arg3[%c0_4, %c0_5] : memref<1x128xf32, #tpu.memory_space<vmem>>, vector<1x128xf32>
    %cst = arith.constant dense<0.000000e+00> : vector<32xf32>
    %4 = vector.multi_reduction <add>, %1, %cst [1] : vector<32x128xf32> to vector<32xf32>
    %5 = vector.shape_cast %4 : vector<32xf32> to vector<32x1xf32>
    %cst_6 = arith.constant 1.280000e+02 : f32
    %6 = vector.broadcast %cst_6 : f32 to vector<32x1xf32>
    %7 = arith.divf %5, %6 : vector<32x1xf32>
    %8 = arith.mulf %1, %1 : vector<32x128xf32>
    %cst_7 = arith.constant dense<0.000000e+00> : vector<32xf32>
    %9 = vector.multi_reduction <add>, %8, %cst_7 [1] : vector<32x128xf32> to vector<32xf32>
    %10 = vector.shape_cast %9 : vector<32xf32> to vector<32x1xf32>
    %cst_8 = arith.constant 1.280000e+02 : f32
    %11 = vector.broadcast %cst_8 : f32 to vector<32x1xf32>
    %12 = arith.divf %10, %11 : vector<32x1xf32>
    %13 = arith.mulf %7, %7 : vector<32x1xf32>
    %14 = arith.subf %12, %13 : vector<32x1xf32>
    %15 = vector.broadcast %7 : vector<32x1xf32> to vector<32x128xf32>
    %16 = arith.subf %1, %15 : vector<32x128xf32>
    %cst_9 = arith.constant 9.99999974E-6 : f32
    %17 = vector.broadcast %cst_9 : f32 to vector<32x1xf32>
    %18 = arith.addf %14, %17 : vector<32x1xf32>
    %19 = math.rsqrt %18 : vector<32x1xf32>
    %20 = vector.broadcast %19 : vector<32x1xf32> to vector<32x128xf32>
    %21 = arith.mulf %16, %20 : vector<32x128xf32>
    %22 = vector.broadcast %2 : vector<1x128xf32> to vector<32x128xf32>
    %23 = arith.mulf %21, %22 : vector<32x128xf32>
    %24 = vector.broadcast %3 : vector<1x128xf32> to vector<32x128xf32>
    %25 = arith.addf %23, %24 : vector<32x128xf32>
    %26 = arith.truncf %25 : vector<32x128xf32> to vector<32x128xbf16>
    %c0_10 = arith.constant 0 : index
    %c0_11 = arith.constant 0 : index
    %27 = vector.load %arg4[%c0_10, %c0_11] : memref<128x384xbf16, #tpu.memory_space<vmem>>, vector<128x384xbf16>
    %cst_12 = arith.constant dense<0.000000e+00> : vector<32x384xf32>
    %28 = tpu.matmul %26, %27, %cst_12 {dimension_numbers = #tpu.dot_dimension_numbers<[1], [0], [0], [1], [0, 0, 1, 1], [], []>} : vector<32x128xbf16>, vector<128x384xbf16>, vector<32x384xf32> -> vector<32x384xf32>
    %c0_13 = arith.constant 0 : index
    %c0_14 = arith.constant 0 : index
    %29 = vector.load %arg5[%c0_13, %c0_14] : memref<1x384xf32, #tpu.memory_space<vmem>>, vector<1x384xf32>
    %30 = vector.broadcast %29 : vector<1x384xf32> to vector<32x384xf32>
    %31 = arith.addf %28, %30 : vector<32x384xf32>
    %32 = vector.extract_strided_slice %31 {offsets = [0, 0], sizes = [32, 128], strides = [1, 1]} : vector<32x384xf32> to vector<32x128xf32>
    %33 = arith.truncf %32 : vector<32x128xf32> to vector<32x128xbf16>
    %34 = vector.extract_strided_slice %31 {offsets = [0, 128], sizes = [32, 128], strides = [1, 1]} : vector<32x384xf32> to vector<32x128xf32>
    %35 = arith.truncf %34 : vector<32x128xf32> to vector<32x128xbf16>
    %36 = vector.extract_strided_slice %31 {offsets = [0, 256], sizes = [32, 128], strides = [1, 1]} : vector<32x384xf32> to vector<32x128xf32>
    %37 = arith.truncf %36 : vector<32x128xf32> to vector<32x128xbf16>
    %c0_15 = arith.constant 0 : index
    %c0_16 = arith.constant 0 : index
    %38 = vector.load %arg6[%c0_15, %c0_16] : memref<128x128xbf16, #tpu.memory_space<vmem>>, vector<128x128xbf16>
    %cst_17 = arith.constant 0.000000e+00 : f32
    %39 = vector.broadcast %cst_17 : f32 to vector<16x128xf32>
    %40 = vector.extract_strided_slice %33 {offsets = [0, 0], sizes = [16, 32], strides = [1, 1]} : vector<32x128xbf16> to vector<16x32xbf16>
    %41 = vector.extract_strided_slice %35 {offsets = [0, 0], sizes = [16, 32], strides = [1, 1]} : vector<32x128xbf16> to vector<16x32xbf16>
    %42 = vector.extract_strided_slice %37 {offsets = [0, 0], sizes = [16, 32], strides = [1, 1]} : vector<32x128xbf16> to vector<16x32xbf16>
    %43 = tpu.transpose %41, [1, 0] : vector<16x32xbf16> -> vector<32x16xbf16>
    %cst_18 = arith.constant dense<0.000000e+00> : vector<16x16xf32>
    %44 = tpu.matmul %40, %43, %cst_18 {dimension_numbers = #tpu.dot_dimension_numbers<[1], [0], [0], [1], [0, 0, 1, 1], [], []>} : vector<16x32xbf16>, vector<32x16xbf16>, vector<16x16xf32> -> vector<16x16xf32>
    %cst_19 = arith.constant dense<0xFF800000> : vector<16xf32>
    %45 = vector.multi_reduction <maximumf>, %44, %cst_19 [1] : vector<16x16xf32> to vector<16xf32>
    %46 = vector.shape_cast %45 : vector<16xf32> to vector<16x1xf32>
    %47 = vector.broadcast %46 : vector<16x1xf32> to vector<16x16xf32>
    %48 = arith.subf %44, %47 : vector<16x16xf32>
    %49 = math.exp %48 : vector<16x16xf32>
    %cst_20 = arith.constant dense<0.000000e+00> : vector<16xf32>
    %50 = vector.multi_reduction <add>, %49, %cst_20 [1] : vector<16x16xf32> to vector<16xf32>
    %51 = vector.shape_cast %50 : vector<16xf32> to vector<16x1xf32>
    %52 = tpu.reciprocal %51 {approx = true} : vector<16x1xf32> -> vector<16x1xf32>
    %53 = vector.broadcast %52 : vector<16x1xf32> to vector<16x16xf32>
    %54 = arith.mulf %49, %53 : vector<16x16xf32>
    %55 = arith.truncf %54 : vector<16x16xf32> to vector<16x16xbf16>
    %cst_21 = arith.constant dense<0.000000e+00> : vector<16x32xf32>
    %56 = tpu.matmul %55, %42, %cst_21 {dimension_numbers = #tpu.dot_dimension_numbers<[1], [0], [0], [1], [0, 0, 1, 1], [], []>} : vector<16x16xbf16>, vector<16x32xbf16>, vector<16x32xf32> -> vector<16x32xf32>
    %57 = arith.truncf %56 : vector<16x32xf32> to vector<16x32xbf16>
    %58 = vector.extract_strided_slice %38 {offsets = [0, 0], sizes = [32, 128], strides = [1, 1]} : vector<128x128xbf16> to vector<32x128xbf16>
    %cst_22 = arith.constant dense<0.000000e+00> : vector<16x128xf32>
    %59 = tpu.matmul %57, %58, %cst_22 {dimension_numbers = #tpu.dot_dimension_numbers<[1], [0], [0], [1], [0, 0, 1, 1], [], []>} : vector<16x32xbf16>, vector<32x128xbf16>, vector<16x128xf32> -> vector<16x128xf32>
    %60 = arith.addf %39, %59 : vector<16x128xf32>
    %61 = vector.extract_strided_slice %33 {offsets = [0, 32], sizes = [16, 32], strides = [1, 1]} : vector<32x128xbf16> to vector<16x32xbf16>
    %62 = vector.extract_strided_slice %35 {offsets = [0, 32], sizes = [16, 32], strides = [1, 1]} : vector<32x128xbf16> to vector<16x32xbf16>
    %63 = vector.extract_strided_slice %37 {offsets = [0, 32], sizes = [16, 32], strides = [1, 1]} : vector<32x128xbf16> to vector<16x32xbf16>
    %64 = tpu.transpose %62, [1, 0] : vector<16x32xbf16> -> vector<32x16xbf16>
    %cst_23 = arith.constant dense<0.000000e+00> : vector<16x16xf32>
    %65 = tpu.matmul %61, %64, %cst_23 {dimension_numbers = #tpu.dot_dimension_numbers<[1], [0], [0], [1], [0, 0, 1, 1], [], []>} : vector<16x32xbf16>, vector<32x16xbf16>, vector<16x16xf32> -> vector<16x16xf32>
    %cst_24 = arith.constant dense<0xFF800000> : vector<16xf32>
    %66 = vector.multi_reduction <maximumf>, %65, %cst_24 [1] : vector<16x16xf32> to vector<16xf32>
    %67 = vector.shape_cast %66 : vector<16xf32> to vector<16x1xf32>
    %68 = vector.broadcast %67 : vector<16x1xf32> to vector<16x16xf32>
    %69 = arith.subf %65, %68 : vector<16x16xf32>
    %70 = math.exp %69 : vector<16x16xf32>
    %cst_25 = arith.constant dense<0.000000e+00> : vector<16xf32>
    %71 = vector.multi_reduction <add>, %70, %cst_25 [1] : vector<16x16xf32> to vector<16xf32>
    %72 = vector.shape_cast %71 : vector<16xf32> to vector<16x1xf32>
    %73 = tpu.reciprocal %72 {approx = true} : vector<16x1xf32> -> vector<16x1xf32>
    %74 = vector.broadcast %73 : vector<16x1xf32> to vector<16x16xf32>
    %75 = arith.mulf %70, %74 : vector<16x16xf32>
    %76 = arith.truncf %75 : vector<16x16xf32> to vector<16x16xbf16>
    %cst_26 = arith.constant dense<0.000000e+00> : vector<16x32xf32>
    %77 = tpu.matmul %76, %63, %cst_26 {dimension_numbers = #tpu.dot_dimension_numbers<[1], [0], [0], [1], [0, 0, 1, 1], [], []>} : vector<16x16xbf16>, vector<16x32xbf16>, vector<16x32xf32> -> vector<16x32xf32>
    %78 = arith.truncf %77 : vector<16x32xf32> to vector<16x32xbf16>
    %79 = vector.extract_strided_slice %38 {offsets = [32, 0], sizes = [32, 128], strides = [1, 1]} : vector<128x128xbf16> to vector<32x128xbf16>
    %cst_27 = arith.constant dense<0.000000e+00> : vector<16x128xf32>
    %80 = tpu.matmul %78, %79, %cst_27 {dimension_numbers = #tpu.dot_dimension_numbers<[1], [0], [0], [1], [0, 0, 1, 1], [], []>} : vector<16x32xbf16>, vector<32x128xbf16>, vector<16x128xf32> -> vector<16x128xf32>
    %81 = arith.addf %60, %80 : vector<16x128xf32>
    %82 = vector.extract_strided_slice %33 {offsets = [0, 64], sizes = [16, 32], strides = [1, 1]} : vector<32x128xbf16> to vector<16x32xbf16>
    %83 = vector.extract_strided_slice %35 {offsets = [0, 64], sizes = [16, 32], strides = [1, 1]} : vector<32x128xbf16> to vector<16x32xbf16>
    %84 = vector.extract_strided_slice %37 {offsets = [0, 64], sizes = [16, 32], strides = [1, 1]} : vector<32x128xbf16> to vector<16x32xbf16>
    %85 = tpu.transpose %83, [1, 0] : vector<16x32xbf16> -> vector<32x16xbf16>
    %cst_28 = arith.constant dense<0.000000e+00> : vector<16x16xf32>
    %86 = tpu.matmul %82, %85, %cst_28 {dimension_numbers = #tpu.dot_dimension_numbers<[1], [0], [0], [1], [0, 0, 1, 1], [], []>} : vector<16x32xbf16>, vector<32x16xbf16>, vector<16x16xf32> -> vector<16x16xf32>
    %cst_29 = arith.constant dense<0xFF800000> : vector<16xf32>
    %87 = vector.multi_reduction <maximumf>, %86, %cst_29 [1] : vector<16x16xf32> to vector<16xf32>
    %88 = vector.shape_cast %87 : vector<16xf32> to vector<16x1xf32>
    %89 = vector.broadcast %88 : vector<16x1xf32> to vector<16x16xf32>
    %90 = arith.subf %86, %89 : vector<16x16xf32>
    %91 = math.exp %90 : vector<16x16xf32>
    %cst_30 = arith.constant dense<0.000000e+00> : vector<16xf32>
    %92 = vector.multi_reduction <add>, %91, %cst_30 [1] : vector<16x16xf32> to vector<16xf32>
    %93 = vector.shape_cast %92 : vector<16xf32> to vector<16x1xf32>
    %94 = tpu.reciprocal %93 {approx = true} : vector<16x1xf32> -> vector<16x1xf32>
    %95 = vector.broadcast %94 : vector<16x1xf32> to vector<16x16xf32>
    %96 = arith.mulf %91, %95 : vector<16x16xf32>
    %97 = arith.truncf %96 : vector<16x16xf32> to vector<16x16xbf16>
    %cst_31 = arith.constant dense<0.000000e+00> : vector<16x32xf32>
    %98 = tpu.matmul %97, %84, %cst_31 {dimension_numbers = #tpu.dot_dimension_numbers<[1], [0], [0], [1], [0, 0, 1, 1], [], []>} : vector<16x16xbf16>, vector<16x32xbf16>, vector<16x32xf32> -> vector<16x32xf32>
    %99 = arith.truncf %98 : vector<16x32xf32> to vector<16x32xbf16>
    %100 = vector.extract_strided_slice %38 {offsets = [64, 0], sizes = [32, 128], strides = [1, 1]} : vector<128x128xbf16> to vector<32x128xbf16>
    %cst_32 = arith.constant dense<0.000000e+00> : vector<16x128xf32>
    %101 = tpu.matmul %99, %100, %cst_32 {dimension_numbers = #tpu.dot_dimension_numbers<[1], [0], [0], [1], [0, 0, 1, 1], [], []>} : vector<16x32xbf16>, vector<32x128xbf16>, vector<16x128xf32> -> vector<16x128xf32>
    %102 = arith.addf %81, %101 : vector<16x128xf32>
    %103 = vector.extract_strided_slice %33 {offsets = [0, 96], sizes = [16, 32], strides = [1, 1]} : vector<32x128xbf16> to vector<16x32xbf16>
    %104 = vector.extract_strided_slice %35 {offsets = [0, 96], sizes = [16, 32], strides = [1, 1]} : vector<32x128xbf16> to vector<16x32xbf16>
    %105 = vector.extract_strided_slice %37 {offsets = [0, 96], sizes = [16, 32], strides = [1, 1]} : vector<32x128xbf16> to vector<16x32xbf16>
    %106 = tpu.transpose %104, [1, 0] : vector<16x32xbf16> -> vector<32x16xbf16>
    %cst_33 = arith.constant dense<0.000000e+00> : vector<16x16xf32>
    %107 = tpu.matmul %103, %106, %cst_33 {dimension_numbers = #tpu.dot_dimension_numbers<[1], [0], [0], [1], [0, 0, 1, 1], [], []>} : vector<16x32xbf16>, vector<32x16xbf16>, vector<16x16xf32> -> vector<16x16xf32>
    %cst_34 = arith.constant dense<0xFF800000> : vector<16xf32>
    %108 = vector.multi_reduction <maximumf>, %107, %cst_34 [1] : vector<16x16xf32> to vector<16xf32>
    %109 = vector.shape_cast %108 : vector<16xf32> to vector<16x1xf32>
    %110 = vector.broadcast %109 : vector<16x1xf32> to vector<16x16xf32>
    %111 = arith.subf %107, %110 : vector<16x16xf32>
    %112 = math.exp %111 : vector<16x16xf32>
    %cst_35 = arith.constant dense<0.000000e+00> : vector<16xf32>
    %113 = vector.multi_reduction <add>, %112, %cst_35 [1] : vector<16x16xf32> to vector<16xf32>
    %114 = vector.shape_cast %113 : vector<16xf32> to vector<16x1xf32>
    %115 = tpu.reciprocal %114 {approx = true} : vector<16x1xf32> -> vector<16x1xf32>
    %116 = vector.broadcast %115 : vector<16x1xf32> to vector<16x16xf32>
    %117 = arith.mulf %112, %116 : vector<16x16xf32>
    %118 = arith.truncf %117 : vector<16x16xf32> to vector<16x16xbf16>
    %cst_36 = arith.constant dense<0.000000e+00> : vector<16x32xf32>
    %119 = tpu.matmul %118, %105, %cst_36 {dimension_numbers = #tpu.dot_dimension_numbers<[1], [0], [0], [1], [0, 0, 1, 1], [], []>} : vector<16x16xbf16>, vector<16x32xbf16>, vector<16x32xf32> -> vector<16x32xf32>
    %120 = arith.truncf %119 : vector<16x32xf32> to vector<16x32xbf16>
    %121 = vector.extract_strided_slice %38 {offsets = [96, 0], sizes = [32, 128], strides = [1, 1]} : vector<128x128xbf16> to vector<32x128xbf16>
    %cst_37 = arith.constant dense<0.000000e+00> : vector<16x128xf32>
    %122 = tpu.matmul %120, %121, %cst_37 {dimension_numbers = #tpu.dot_dimension_numbers<[1], [0], [0], [1], [0, 0, 1, 1], [], []>} : vector<16x32xbf16>, vector<32x128xbf16>, vector<16x128xf32> -> vector<16x128xf32>
    %123 = arith.addf %102, %122 : vector<16x128xf32>
    %cst_38 = arith.constant 0.000000e+00 : f32
    %124 = vector.broadcast %cst_38 : f32 to vector<16x128xf32>
    %125 = vector.extract_strided_slice %33 {offsets = [16, 0], sizes = [16, 32], strides = [1, 1]} : vector<32x128xbf16> to vector<16x32xbf16>
    %126 = vector.extract_strided_slice %35 {offsets = [16, 0], sizes = [16, 32], strides = [1, 1]} : vector<32x128xbf16> to vector<16x32xbf16>
    %127 = vector.extract_strided_slice %37 {offsets = [16, 0], sizes = [16, 32], strides = [1, 1]} : vector<32x128xbf16> to vector<16x32xbf16>
    %128 = tpu.transpose %126, [1, 0] : vector<16x32xbf16> -> vector<32x16xbf16>
    %cst_39 = arith.constant dense<0.000000e+00> : vector<16x16xf32>
    %129 = tpu.matmul %125, %128, %cst_39 {dimension_numbers = #tpu.dot_dimension_numbers<[1], [0], [0], [1], [0, 0, 1, 1], [], []>} : vector<16x32xbf16>, vector<32x16xbf16>, vector<16x16xf32> -> vector<16x16xf32>
    %cst_40 = arith.constant dense<0xFF800000> : vector<16xf32>
    %130 = vector.multi_reduction <maximumf>, %129, %cst_40 [1] : vector<16x16xf32> to vector<16xf32>
    %131 = vector.shape_cast %130 : vector<16xf32> to vector<16x1xf32>
    %132 = vector.broadcast %131 : vector<16x1xf32> to vector<16x16xf32>
    %133 = arith.subf %129, %132 : vector<16x16xf32>
    %134 = math.exp %133 : vector<16x16xf32>
    %cst_41 = arith.constant dense<0.000000e+00> : vector<16xf32>
    %135 = vector.multi_reduction <add>, %134, %cst_41 [1] : vector<16x16xf32> to vector<16xf32>
    %136 = vector.shape_cast %135 : vector<16xf32> to vector<16x1xf32>
    %137 = tpu.reciprocal %136 {approx = true} : vector<16x1xf32> -> vector<16x1xf32>
    %138 = vector.broadcast %137 : vector<16x1xf32> to vector<16x16xf32>
    %139 = arith.mulf %134, %138 : vector<16x16xf32>
    %140 = arith.truncf %139 : vector<16x16xf32> to vector<16x16xbf16>
    %cst_42 = arith.constant dense<0.000000e+00> : vector<16x32xf32>
    %141 = tpu.matmul %140, %127, %cst_42 {dimension_numbers = #tpu.dot_dimension_numbers<[1], [0], [0], [1], [0, 0, 1, 1], [], []>} : vector<16x16xbf16>, vector<16x32xbf16>, vector<16x32xf32> -> vector<16x32xf32>
    %142 = arith.truncf %141 : vector<16x32xf32> to vector<16x32xbf16>
    %143 = vector.extract_strided_slice %38 {offsets = [0, 0], sizes = [32, 128], strides = [1, 1]} : vector<128x128xbf16> to vector<32x128xbf16>
    %cst_43 = arith.constant dense<0.000000e+00> : vector<16x128xf32>
    %144 = tpu.matmul %142, %143, %cst_43 {dimension_numbers = #tpu.dot_dimension_numbers<[1], [0], [0], [1], [0, 0, 1, 1], [], []>} : vector<16x32xbf16>, vector<32x128xbf16>, vector<16x128xf32> -> vector<16x128xf32>
    %145 = arith.addf %124, %144 : vector<16x128xf32>
    %146 = vector.extract_strided_slice %33 {offsets = [16, 32], sizes = [16, 32], strides = [1, 1]} : vector<32x128xbf16> to vector<16x32xbf16>
    %147 = vector.extract_strided_slice %35 {offsets = [16, 32], sizes = [16, 32], strides = [1, 1]} : vector<32x128xbf16> to vector<16x32xbf16>
    %148 = vector.extract_strided_slice %37 {offsets = [16, 32], sizes = [16, 32], strides = [1, 1]} : vector<32x128xbf16> to vector<16x32xbf16>
    %149 = tpu.transpose %147, [1, 0] : vector<16x32xbf16> -> vector<32x16xbf16>
    %cst_44 = arith.constant dense<0.000000e+00> : vector<16x16xf32>
    %150 = tpu.matmul %146, %149, %cst_44 {dimension_numbers = #tpu.dot_dimension_numbers<[1], [0], [0], [1], [0, 0, 1, 1], [], []>} : vector<16x32xbf16>, vector<32x16xbf16>, vector<16x16xf32> -> vector<16x16xf32>
    %cst_45 = arith.constant dense<0xFF800000> : vector<16xf32>
    %151 = vector.multi_reduction <maximumf>, %150, %cst_45 [1] : vector<16x16xf32> to vector<16xf32>
    %152 = vector.shape_cast %151 : vector<16xf32> to vector<16x1xf32>
    %153 = vector.broadcast %152 : vector<16x1xf32> to vector<16x16xf32>
    %154 = arith.subf %150, %153 : vector<16x16xf32>
    %155 = math.exp %154 : vector<16x16xf32>
    %cst_46 = arith.constant dense<0.000000e+00> : vector<16xf32>
    %156 = vector.multi_reduction <add>, %155, %cst_46 [1] : vector<16x16xf32> to vector<16xf32>
    %157 = vector.shape_cast %156 : vector<16xf32> to vector<16x1xf32>
    %158 = tpu.reciprocal %157 {approx = true} : vector<16x1xf32> -> vector<16x1xf32>
    %159 = vector.broadcast %158 : vector<16x1xf32> to vector<16x16xf32>
    %160 = arith.mulf %155, %159 : vector<16x16xf32>
    %161 = arith.truncf %160 : vector<16x16xf32> to vector<16x16xbf16>
    %cst_47 = arith.constant dense<0.000000e+00> : vector<16x32xf32>
    %162 = tpu.matmul %161, %148, %cst_47 {dimension_numbers = #tpu.dot_dimension_numbers<[1], [0], [0], [1], [0, 0, 1, 1], [], []>} : vector<16x16xbf16>, vector<16x32xbf16>, vector<16x32xf32> -> vector<16x32xf32>
    %163 = arith.truncf %162 : vector<16x32xf32> to vector<16x32xbf16>
    %164 = vector.extract_strided_slice %38 {offsets = [32, 0], sizes = [32, 128], strides = [1, 1]} : vector<128x128xbf16> to vector<32x128xbf16>
    %cst_48 = arith.constant dense<0.000000e+00> : vector<16x128xf32>
    %165 = tpu.matmul %163, %164, %cst_48 {dimension_numbers = #tpu.dot_dimension_numbers<[1], [0], [0], [1], [0, 0, 1, 1], [], []>} : vector<16x32xbf16>, vector<32x128xbf16>, vector<16x128xf32> -> vector<16x128xf32>
    %166 = arith.addf %145, %165 : vector<16x128xf32>
    %167 = vector.extract_strided_slice %33 {offsets = [16, 64], sizes = [16, 32], strides = [1, 1]} : vector<32x128xbf16> to vector<16x32xbf16>
    %168 = vector.extract_strided_slice %35 {offsets = [16, 64], sizes = [16, 32], strides = [1, 1]} : vector<32x128xbf16> to vector<16x32xbf16>
    %169 = vector.extract_strided_slice %37 {offsets = [16, 64], sizes = [16, 32], strides = [1, 1]} : vector<32x128xbf16> to vector<16x32xbf16>
    %170 = tpu.transpose %168, [1, 0] : vector<16x32xbf16> -> vector<32x16xbf16>
    %cst_49 = arith.constant dense<0.000000e+00> : vector<16x16xf32>
    %171 = tpu.matmul %167, %170, %cst_49 {dimension_numbers = #tpu.dot_dimension_numbers<[1], [0], [0], [1], [0, 0, 1, 1], [], []>} : vector<16x32xbf16>, vector<32x16xbf16>, vector<16x16xf32> -> vector<16x16xf32>
    %cst_50 = arith.constant dense<0xFF800000> : vector<16xf32>
    %172 = vector.multi_reduction <maximumf>, %171, %cst_50 [1] : vector<16x16xf32> to vector<16xf32>
    %173 = vector.shape_cast %172 : vector<16xf32> to vector<16x1xf32>
    %174 = vector.broadcast %173 : vector<16x1xf32> to vector<16x16xf32>
    %175 = arith.subf %171, %174 : vector<16x16xf32>
    %176 = math.exp %175 : vector<16x16xf32>
    %cst_51 = arith.constant dense<0.000000e+00> : vector<16xf32>
    %177 = vector.multi_reduction <add>, %176, %cst_51 [1] : vector<16x16xf32> to vector<16xf32>
    %178 = vector.shape_cast %177 : vector<16xf32> to vector<16x1xf32>
    %179 = tpu.reciprocal %178 {approx = true} : vector<16x1xf32> -> vector<16x1xf32>
    %180 = vector.broadcast %179 : vector<16x1xf32> to vector<16x16xf32>
    %181 = arith.mulf %176, %180 : vector<16x16xf32>
    %182 = arith.truncf %181 : vector<16x16xf32> to vector<16x16xbf16>
    %cst_52 = arith.constant dense<0.000000e+00> : vector<16x32xf32>
    %183 = tpu.matmul %182, %169, %cst_52 {dimension_numbers = #tpu.dot_dimension_numbers<[1], [0], [0], [1], [0, 0, 1, 1], [], []>} : vector<16x16xbf16>, vector<16x32xbf16>, vector<16x32xf32> -> vector<16x32xf32>
    %184 = arith.truncf %183 : vector<16x32xf32> to vector<16x32xbf16>
    %185 = vector.extract_strided_slice %38 {offsets = [64, 0], sizes = [32, 128], strides = [1, 1]} : vector<128x128xbf16> to vector<32x128xbf16>
    %cst_53 = arith.constant dense<0.000000e+00> : vector<16x128xf32>
    %186 = tpu.matmul %184, %185, %cst_53 {dimension_numbers = #tpu.dot_dimension_numbers<[1], [0], [0], [1], [0, 0, 1, 1], [], []>} : vector<16x32xbf16>, vector<32x128xbf16>, vector<16x128xf32> -> vector<16x128xf32>
    %187 = arith.addf %166, %186 : vector<16x128xf32>
    %188 = vector.extract_strided_slice %33 {offsets = [16, 96], sizes = [16, 32], strides = [1, 1]} : vector<32x128xbf16> to vector<16x32xbf16>
    %189 = vector.extract_strided_slice %35 {offsets = [16, 96], sizes = [16, 32], strides = [1, 1]} : vector<32x128xbf16> to vector<16x32xbf16>
    %190 = vector.extract_strided_slice %37 {offsets = [16, 96], sizes = [16, 32], strides = [1, 1]} : vector<32x128xbf16> to vector<16x32xbf16>
    %191 = tpu.transpose %189, [1, 0] : vector<16x32xbf16> -> vector<32x16xbf16>
    %cst_54 = arith.constant dense<0.000000e+00> : vector<16x16xf32>
    %192 = tpu.matmul %188, %191, %cst_54 {dimension_numbers = #tpu.dot_dimension_numbers<[1], [0], [0], [1], [0, 0, 1, 1], [], []>} : vector<16x32xbf16>, vector<32x16xbf16>, vector<16x16xf32> -> vector<16x16xf32>
    %cst_55 = arith.constant dense<0xFF800000> : vector<16xf32>
    %193 = vector.multi_reduction <maximumf>, %192, %cst_55 [1] : vector<16x16xf32> to vector<16xf32>
    %194 = vector.shape_cast %193 : vector<16xf32> to vector<16x1xf32>
    %195 = vector.broadcast %194 : vector<16x1xf32> to vector<16x16xf32>
    %196 = arith.subf %192, %195 : vector<16x16xf32>
    %197 = math.exp %196 : vector<16x16xf32>
    %cst_56 = arith.constant dense<0.000000e+00> : vector<16xf32>
    %198 = vector.multi_reduction <add>, %197, %cst_56 [1] : vector<16x16xf32> to vector<16xf32>
    %199 = vector.shape_cast %198 : vector<16xf32> to vector<16x1xf32>
    %200 = tpu.reciprocal %199 {approx = true} : vector<16x1xf32> -> vector<16x1xf32>
    %201 = vector.broadcast %200 : vector<16x1xf32> to vector<16x16xf32>
    %202 = arith.mulf %197, %201 : vector<16x16xf32>
    %203 = arith.truncf %202 : vector<16x16xf32> to vector<16x16xbf16>
    %cst_57 = arith.constant dense<0.000000e+00> : vector<16x32xf32>
    %204 = tpu.matmul %203, %190, %cst_57 {dimension_numbers = #tpu.dot_dimension_numbers<[1], [0], [0], [1], [0, 0, 1, 1], [], []>} : vector<16x16xbf16>, vector<16x32xbf16>, vector<16x32xf32> -> vector<16x32xf32>
    %205 = arith.truncf %204 : vector<16x32xf32> to vector<16x32xbf16>
    %206 = vector.extract_strided_slice %38 {offsets = [96, 0], sizes = [32, 128], strides = [1, 1]} : vector<128x128xbf16> to vector<32x128xbf16>
    %cst_58 = arith.constant dense<0.000000e+00> : vector<16x128xf32>
    %207 = tpu.matmul %205, %206, %cst_58 {dimension_numbers = #tpu.dot_dimension_numbers<[1], [0], [0], [1], [0, 0, 1, 1], [], []>} : vector<16x32xbf16>, vector<32x128xbf16>, vector<16x128xf32> -> vector<16x128xf32>
    %208 = arith.addf %187, %207 : vector<16x128xf32>
    %209 = tpu.concatenate %123, %208 in 0 : vector<16x128xf32>, vector<16x128xf32> -> vector<32x128xf32>
    %c0_59 = arith.constant 0 : index
    %c0_60 = arith.constant 0 : index
    %210 = vector.load %arg7[%c0_59, %c0_60] : memref<1x128xf32, #tpu.memory_space<vmem>>, vector<1x128xf32>
    %211 = vector.broadcast %210 : vector<1x128xf32> to vector<32x128xf32>
    %212 = arith.addf %209, %211 : vector<32x128xf32>
    %213 = arith.addf %1, %212 : vector<32x128xf32>
    %c0_61 = arith.constant 0 : index
    %c0_62 = arith.constant 0 : index
    %214 = vector.load %arg8[%c0_61, %c0_62] : memref<1x128xf32, #tpu.memory_space<vmem>>, vector<1x128xf32>
    %c0_63 = arith.constant 0 : index
    %c0_64 = arith.constant 0 : index
    %215 = vector.load %arg9[%c0_63, %c0_64] : memref<1x128xf32, #tpu.memory_space<vmem>>, vector<1x128xf32>
    %cst_65 = arith.constant dense<0.000000e+00> : vector<32xf32>
    %216 = vector.multi_reduction <add>, %213, %cst_65 [1] : vector<32x128xf32> to vector<32xf32>
    %217 = vector.shape_cast %216 : vector<32xf32> to vector<32x1xf32>
    %cst_66 = arith.constant 1.280000e+02 : f32
    %218 = vector.broadcast %cst_66 : f32 to vector<32x1xf32>
    %219 = arith.divf %217, %218 : vector<32x1xf32>
    %220 = arith.mulf %213, %213 : vector<32x128xf32>
    %cst_67 = arith.constant dense<0.000000e+00> : vector<32xf32>
    %221 = vector.multi_reduction <add>, %220, %cst_67 [1] : vector<32x128xf32> to vector<32xf32>
    %222 = vector.shape_cast %221 : vector<32xf32> to vector<32x1xf32>
    %cst_68 = arith.constant 1.280000e+02 : f32
    %223 = vector.broadcast %cst_68 : f32 to vector<32x1xf32>
    %224 = arith.divf %222, %223 : vector<32x1xf32>
    %225 = arith.mulf %219, %219 : vector<32x1xf32>
    %226 = arith.subf %224, %225 : vector<32x1xf32>
    %227 = vector.broadcast %219 : vector<32x1xf32> to vector<32x128xf32>
    %228 = arith.subf %213, %227 : vector<32x128xf32>
    %cst_69 = arith.constant 9.99999974E-6 : f32
    %229 = vector.broadcast %cst_69 : f32 to vector<32x1xf32>
    %230 = arith.addf %226, %229 : vector<32x1xf32>
    %231 = math.rsqrt %230 : vector<32x1xf32>
    %232 = vector.broadcast %231 : vector<32x1xf32> to vector<32x128xf32>
    %233 = arith.mulf %228, %232 : vector<32x128xf32>
    %234 = vector.broadcast %214 : vector<1x128xf32> to vector<32x128xf32>
    %235 = arith.mulf %233, %234 : vector<32x128xf32>
    %236 = vector.broadcast %215 : vector<1x128xf32> to vector<32x128xf32>
    %237 = arith.addf %235, %236 : vector<32x128xf32>
    %238 = arith.truncf %237 : vector<32x128xf32> to vector<32x128xbf16>
    %c0_70 = arith.constant 0 : index
    %c0_71 = arith.constant 0 : index
    %239 = vector.load %arg10[%c0_70, %c0_71] : memref<128x256xbf16, #tpu.memory_space<vmem>>, vector<128x256xbf16>
    %cst_72 = arith.constant dense<0.000000e+00> : vector<32x256xf32>
    %240 = tpu.matmul %238, %239, %cst_72 {dimension_numbers = #tpu.dot_dimension_numbers<[1], [0], [0], [1], [0, 0, 1, 1], [], []>} : vector<32x128xbf16>, vector<128x256xbf16>, vector<32x256xf32> -> vector<32x256xf32>
    %c0_73 = arith.constant 0 : index
    %c0_74 = arith.constant 0 : index
    %241 = vector.load %arg11[%c0_73, %c0_74] : memref<1x256xf32, #tpu.memory_space<vmem>>, vector<1x256xf32>
    %242 = vector.broadcast %241 : vector<1x256xf32> to vector<32x256xf32>
    %243 = arith.addf %240, %242 : vector<32x256xf32>
    %cst_75 = arith.constant 5.000000e-01 : f32
    %244 = vector.broadcast %cst_75 : f32 to vector<32x256xf32>
    %245 = arith.mulf %244, %243 : vector<32x256xf32>
    %cst_76 = arith.constant 4.471500e-02 : f32
    %246 = vector.broadcast %cst_76 : f32 to vector<32x256xf32>
    %247 = arith.mulf %246, %243 : vector<32x256xf32>
    %248 = arith.mulf %247, %243 : vector<32x256xf32>
    %249 = arith.mulf %248, %243 : vector<32x256xf32>
    %250 = arith.addf %243, %249 : vector<32x256xf32>
    %cst_77 = arith.constant 0.797884583 : f32
    %251 = vector.broadcast %cst_77 : f32 to vector<32x256xf32>
    %252 = arith.mulf %251, %250 : vector<32x256xf32>
    %253 = math.tanh %252 : vector<32x256xf32>
    %cst_78 = arith.constant 1.000000e+00 : f32
    %254 = vector.broadcast %cst_78 : f32 to vector<32x256xf32>
    %255 = arith.addf %254, %253 : vector<32x256xf32>
    %256 = arith.mulf %245, %255 : vector<32x256xf32>
    %257 = arith.truncf %256 : vector<32x256xf32> to vector<32x256xbf16>
    %c0_79 = arith.constant 0 : index
    %c0_80 = arith.constant 0 : index
    %258 = vector.load %arg12[%c0_79, %c0_80] : memref<256x128xbf16, #tpu.memory_space<vmem>>, vector<256x128xbf16>
    %cst_81 = arith.constant dense<0.000000e+00> : vector<32x128xf32>
    %259 = tpu.matmul %257, %258, %cst_81 {dimension_numbers = #tpu.dot_dimension_numbers<[1], [0], [0], [1], [0, 0, 1, 1], [], []>} : vector<32x256xbf16>, vector<256x128xbf16>, vector<32x128xf32> -> vector<32x128xf32>
    %c0_82 = arith.constant 0 : index
    %c0_83 = arith.constant 0 : index
    %260 = vector.load %arg13[%c0_82, %c0_83] : memref<1x128xf32, #tpu.memory_space<vmem>>, vector<1x128xf32>
    %261 = vector.broadcast %260 : vector<1x128xf32> to vector<32x128xf32>
    %262 = arith.addf %259, %261 : vector<32x128xf32>
    %263 = arith.addf %213, %262 : vector<32x128xf32>
    %264 = vector.shape_cast %263 : vector<32x128xf32> to vector<2x16x128xf32>
    %c0_84 = arith.constant 0 : index
    %c0_85 = arith.constant 0 : index
    %c0_86 = arith.constant 0 : index
    %265 = vector.load %arg14[%c0_84, %c0_85, %c0_86] : memref<2x16x128xf32, #tpu.memory_space<vmem>>, vector<2x16x128xf32>
    tpu.vector_store %arg14[%c0_84, %c0_85, %c0_86], %264 {strides = array<i32>} : memref<2x16x128xf32, #tpu.memory_space<vmem>>, vector<2x16x128xf32>,
    return
  }
  func.func @transform_0(%arg0: i32) -> (i32, i32, i32) {
    %c0_i32 = arith.constant 0 : i32
    %c0_i32_0 = arith.constant 0 : i32
    %c0_i32_1 = arith.constant 0 : i32
    return %arg0, %c0_i32, %c0_i32_0 : i32, i32, i32
  }
  func.func @transform_1(%arg0: i32) -> (i32, i32) {
    %c0_i32 = arith.constant 0 : i32
    %c0_i32_0 = arith.constant 0 : i32
    %c0_i32_1 = arith.constant 0 : i32
    return %c0_i32, %c0_i32_0 : i32, i32
  }
  func.func @transform_2(%arg0: i32) -> (i32, i32) {
    %c0_i32 = arith.constant 0 : i32
    %c0_i32_0 = arith.constant 0 : i32
    %c0_i32_1 = arith.constant 0 : i32
    return %c0_i32, %c0_i32_0 : i32, i32
  }
  func.func @transform_3(%arg0: i32) -> (i32, i32) {
    %c0_i32 = arith.constant 0 : i32
    %c0_i32_0 = arith.constant 0 : i32
    %c0_i32_1 = arith.constant 0 : i32
    return %c0_i32, %c0_i32_0 : i32, i32
  }
  func.func @transform_4(%arg0: i32) -> (i32, i32) {
    %c0_i32 = arith.constant 0 : i32
    %c0_i32_0 = arith.constant 0 : i32
    %c0_i32_1 = arith.constant 0 : i32
    return %c0_i32, %c0_i32_0 : i32, i32
  }
  func.func @transform_5(%arg0: i32) -> (i32, i32) {
    %c0_i32 = arith.constant 0 : i32
    %c0_i32_0 = arith.constant 0 : i32
    %c0_i32_1 = arith.constant 0 : i32
    return %c0_i32, %c0_i32_0 : i32, i32
  }
  func.func @transform_6(%arg0: i32) -> (i32, i32) {
    %c0_i32 = arith.constant 0 : i32
    %c0_i32_0 = arith.constant 0 : i32
    %c0_i32_1 = arith.constant 0 : i32
    return %c0_i32, %c0_i32_0 : i32, i32
  }
  func.func @transform_7(%arg0: i32) -> (i32, i32) {
    %c0_i32 = arith.constant 0 : i32
    %c0_i32_0 = arith.constant 0 : i32
    %c0_i32_1 = arith.constant 0 : i32
    return %c0_i32, %c0_i32_0 : i32, i32
  }
  func.func @transform_8(%arg0: i32) -> (i32, i32) {
    %c0_i32 = arith.constant 0 : i32
    %c0_i32_0 = arith.constant 0 : i32
    %c0_i32_1 = arith.constant 0 : i32
    return %c0_i32, %c0_i32_0 : i32, i32
  }
  func.func @transform_9(%arg0: i32) -> (i32, i32) {
    %c0_i32 = arith.constant 0 : i32
    %c0_i32_0 = arith.constant 0 : i32
    %c0_i32_1 = arith.constant 0 : i32
    return %c0_i32, %c0_i32_0 : i32, i32
  }
  func.func @transform_10(%arg0: i32) -> (i32, i32) {
    %c0_i32 = arith.constant 0 : i32
    %c0_i32_0 = arith.constant 0 : i32
    %c0_i32_1 = arith.constant 0 : i32
    return %c0_i32, %c0_i32_0 : i32, i32
  }
  func.func @transform_11(%arg0: i32) -> (i32, i32) {
    %c0_i32 = arith.constant 0 : i32
    %c0_i32_0 = arith.constant 0 : i32
    %c0_i32_1 = arith.constant 0 : i32
    return %c0_i32, %c0_i32_0 : i32, i32
  }
  func.func @transform_12(%arg0: i32) -> (i32, i32) {
    %c0_i32 = arith.constant 0 : i32
    %c0_i32_0 = arith.constant 0 : i32
    %c0_i32_1 = arith.constant 0 : i32
    return %c0_i32, %c0_i32_0 : i32, i32
  }
  func.func @transform_13(%arg0: i32) -> (i32, i32, i32) {
    %c0_i32 = arith.constant 0 : i32
    %c0_i32_0 = arith.constant 0 : i32
    %c0_i32_1 = arith.constant 0 : i32
    return %arg0, %c0_i32, %c0_i32_0 : i32, i32, i32
  }
}

</mosaic_0001>

<bundles_post_ra>
// kernel: tpu_custom_call.1
= control target key start
LH: loop header
LB: loop body
LE: loop exit
PB: predicated region body
PF: predicated region fallthrough
CT: control target
= control target key end

     0   :  { %18 = vsyncpa [#allocation3], 0  ;;  %s3701_s0 = inlined_call_operand.hbm [shape: f32[2,16,128], index: 0, kind: input, shape index: {}]   ;;  %s3702_s1 = inlined_call_operand.hbm [shape: f32[1,128], index: 1, kind: input, shape index: {}]   ;;  %s3703_s2 = inlined_call_operand.hbm [shape: f32[1,128], index: 2, kind: input, shape index: {}]   ;;  %s3704_s3 = inlined_call_operand.hbm [shape: bf16[128,384], index: 3, kind: input, shape index: {}]   ;;  %s3705_s4 = inlined_call_operand.vmem [shape: f32[1,384], index: 4, kind: input, shape index: {}]   ;;  %s3706_s5 = inlined_call_operand.hbm [shape: bf16[128,128], index: 5, kind: input, shape index: {}]   ;;  %s3707_s6 = inlined_call_operand.vmem [shape: f32[1,128], index: 6, kind: input, shape index: {}]   ;;  %s3708_s7 = inlined_call_operand.vmem [shape: f32[1,128], index: 7, kind: input, shape index: {}]   ;;  %s3709_s8 = inlined_call_operand.vmem [shape: f32[1,128], index: 8, kind: input, shape index: {}]   ;;  %s3710_s9 = inlined_call_operand.hbm [shape: bf16[128,256], index: 9, kind: input, shape index: {}]   ;;  %s3711_s10 = inlined_call_operand.vmem [shape: f32[1,256], index: 10, kind: input, shape index: {}]   ;;  %s3712_s11 = inlined_call_operand.hbm [shape: bf16[256,128], index: 11, kind: input, shape index: {}]   ;;  %s3713_s12 = inlined_call_operand.vmem [shape: f32[1,128], index: 12, kind: input, shape index: {}]   ;;  %s3714_s13 = inlined_call_operand.hbm [shape: f32[2,16,128], index: 13, kind: output, shape index: {}]  }
   0x1   :  { %19 = vsyncpa [#allocation6], 0 }
   0x2   :  { %20 = vsyncpa [#allocation9], 0 }
   0x3   :  { %21 = vsyncpa [#allocation12], 0 }
   0x4   :  { %22 = vsyncpa [#allocation4], 0  ;;  %s3174_s25 = smov [#allocation5]   ;;  %s3175_s27 = smov [#allocation8]  }
   0x5   :  { %s41_s26 = sshll.u32 %s3174_s25, 4  ;;  %s60_s28 = sshll.u32 %s3175_s27, 4  ;;  %s42_s26 = int_to_ptr.vmem [resolvable:$true] %s41_s26  ;;  %s61_s28 = int_to_ptr.vmem [resolvable:$true] %s60_s28 }
   0x6   :  { %s3012_s29 = scalar_lea.vmem %s42_s26, 16  ;;  %s3016_s30 = scalar_lea.vmem %s42_s26, 32 }
   0x7   :  { %p3013_p0 = scmp.ne.s32.totalorder %s42_s26, %s3012_s29  ;;  %p3017_p1 = scmp.lt.s32.totalorder %s42_s26, %s42_s26 }
   0x8   :  { %p3018_p2 = scmp.lt.s32.totalorder %s3016_s30, %s3012_s29 }
   0xa   :  { %p3019_p3 = por %p3018_p2, %p3017_p1 }
   0xc   :  { %p3020_p4 = pnand %p3019_p3, %p3013_p0 }
   0xe   :  { %3023 = shalt.err (!%p3020_p4)
}
   0xf   :  { %44 = dma.hbm_to_vmem [thread:$0]  %s3702_s1, 16, %s42_s26, [#allocation6]  }
  0x10   :  { %s3032_s16 = scalar_lea.vmem %s61_s28, 3072  ;;  %p3037_p6 = scmp.lt.s32.totalorder %s61_s28, %s61_s28 }
  0x11   :  { %p3033_p5 = scmp.ne.s32.totalorder %s61_s28, %s3032_s16  ;;  %p3038_p7 = scmp.lt.s32.totalorder %s3032_s16, %s3032_s16 }
  0x13   :  { %p3039_p8 = por %p3038_p7, %p3037_p6 }
  0x15   :  { %p3040_p9 = pnand %p3039_p8, %p3033_p5 }
  0x17   :  { %3043 = shalt.err (!%p3040_p9)
}
  0x18   :  { %s3176_s17 = smov 192   ;;  %s3177_s18 = smov 12  }
  0x19   :  { %66 = dma.hbm_to_vmem [thread:$0]  %s3704_s3, 3072, %s61_s28, [#allocation9], %s3176_s17, %s3176_s17, %s3177_s18  }
  0x1a   :  { %s3178_s21 = smov [#allocation11]   ;;  %s3179_s23 = smov [#allocation2]  }
  0x1b   :  { %s92_s22 = sshll.u32 %s3178_s21, 4  ;;  %s28_s24 = sshll.u32 %s3179_s23, 4  ;;  %s93_s22 = int_to_ptr.vmem [resolvable:$true] %s92_s22  ;;  %s29_s24 = int_to_ptr.vmem [resolvable:$true] %s28_s24 }
  0x1c   :  { %s3052_s1 = scalar_lea.vmem %s93_s22, 2048  ;;  %p3057_p11 = scmp.lt.s32.totalorder %s93_s22, %s93_s22 }
  0x1d   :  { %p3053_p10 = scmp.ne.s32.totalorder %s93_s22, %s3052_s1  ;;  %p3058_p12 = scmp.lt.s32.totalorder %s3052_s1, %s3052_s1 }
  0x1f   :  { %p3059_p13 = por %p3058_p12, %p3057_p11 }
  0x21   :  { %p3060_p0 = pnand %p3059_p13, %p3053_p10 }
  0x23   :  { %3063 = shalt.err (!%p3060_p0)
}
  0x24   :  { %s3180_s25 = smov 128   ;;  %s3181_s26 = smov 8  }
  0x25   :  { %98 = dma.hbm_to_vmem [thread:$0]  %s3710_s9, 2048, %s93_s22, [#allocation12], %s3180_s25, %s3180_s25, %s3181_s26  }
  0x26   :  { %s3072_s28 = scalar_lea.vmem %s29_s24, 512  ;;  %p3077_p2 = scmp.lt.s32.totalorder %s29_s24, %s29_s24 }
  0x27   :  { %p3073_p1 = scmp.ne.s32.totalorder %s29_s24, %s3072_s28  ;;  %p3078_p3 = scmp.lt.s32.totalorder %s3072_s28, %s3072_s28 }
  0x29   :  { %p3079_p4 = por %p3078_p3, %p3077_p2 }
  0x2b   :  { %p3080_p5 = pnand %p3079_p4, %p3073_p1 }
  0x2d   :  { %3083 = shalt.err (!%p3080_p5)
}
  0x2e   :  { %34 = dma.hbm_to_vmem [thread:$0]  %s3701_s0, 512, %s29_s24, [#allocation3], %s3180_s25, %s3180_s25, %s3181_s26  }
  0x2f   :  { %s3182_s14 = smov [#allocation7]   ;;  %s3183_s16 = smov [#allocation10]  }
  0x30   :  { %s51_s15 = sshll.u32 %s3182_s14, 4  ;;  %s74_s17 = sshll.u32 %s3183_s16, 4  ;;  %s52_s15 = int_to_ptr.vmem [resolvable:$true] %s51_s15  ;;  %s75_s17 = int_to_ptr.vmem [resolvable:$true] %s74_s17 }
  0x31   :  { %s3092_s9 = scalar_lea.vmem %s52_s15, 16  ;;  %s3096_s18 = scalar_lea.vmem %s52_s15, 32 }
  0x32   :  { %p3093_p6 = scmp.ne.s32.totalorder %s52_s15, %s3092_s9  ;;  %p3097_p7 = scmp.lt.s32.totalorder %s52_s15, %s52_s15 }
  0x33   :  { %p3098_p8 = scmp.lt.s32.totalorder %s3096_s18, %s3092_s9 }
  0x35   :  { %p3099_p9 = por %p3098_p8, %p3097_p7 }
  0x37   :  { %p3100_p10 = pnand %p3099_p9, %p3093_p6 }
  0x39   :  { %3103 = shalt.err (!%p3100_p10)
}
  0x3a   :  { %54 = dma.hbm_to_vmem [thread:$0]  %s3703_s2, 16, %s52_s15, [#allocation6]  }
  0x3b   :  { %s3112_s21 = scalar_lea.vmem %s75_s17, 1024  ;;  %p3117_p12 = scmp.lt.s32.totalorder %s75_s17, %s75_s17 }
  0x3c   :  { %p3113_p11 = scmp.ne.s32.totalorder %s75_s17, %s3112_s21  ;;  %p3118_p13 = scmp.lt.s32.totalorder %s3112_s21, %s3112_s21 }
  0x3e   :  { %p3119_p0 = por %p3118_p13, %p3117_p12 }
  0x40   :  { %p3120_p1 = pnand %p3119_p0, %p3113_p11 }
  0x42   :  { %3123 = shalt.err (!%p3120_p1)
}
  0x43   :  { %s3184_s0 = smov 64   ;;  %s3185_s22 = smov 4  }
  0x44   :  { %80 = dma.hbm_to_vmem [thread:$0]  %s3706_s5, 1024, %s75_s17, [#allocation9], %s3184_s0, %s3184_s0, %s3185_s22  }
  0x45   :  { %s3186_s1 = smov [#allocation13]  }
  0x46   :  { %s106_s27 = sshll.u32 %s3186_s1, 4  ;;  %s107_s27 = int_to_ptr.vmem [resolvable:$true] %s106_s27 }
  0x47   :  { %s3132_s3 = scalar_lea.vmem %s107_s27, 2048  ;;  %p3137_p3 = scmp.lt.s32.totalorder %s107_s27, %s107_s27 }
  0x48   :  { %p3133_p2 = scmp.ne.s32.totalorder %s107_s27, %s3132_s3  ;;  %p3138_p4 = scmp.lt.s32.totalorder %s3132_s3, %s3132_s3 }
  0x4a   :  { %p3139_p5 = por %p3138_p4, %p3137_p3 }
  0x4c   :  { %p3140_p6 = pnand %p3139_p5, %p3133_p2 }
  0x4e   :  { %3143 = shalt.err (!%p3140_p6)
}
  0x4f   :  { %112 = dma.hbm_to_vmem [thread:$0]  %s3712_s11, 2048, %s107_s27, [#allocation12], %s3184_s0, %s3184_s0, %s3185_s22  }
  0x50   :  { %3164 = dma.done.wait [#allocation3], 512  }
  0x51   :  { %3165 = vsyncadd [#allocation3], 4294966784 }
  0x52   :  { %3166 = dma.done.wait [#allocation6], 32  }
  0x53   :  { %3167 = vsyncadd [#allocation6], 4294967264 }
  0x54   :  { %3168 = dma.done.wait [#allocation9], 4096  }
  0x55   :  { %3169 = vsyncadd [#allocation9], 4294963200 }
  0x56   :  { %3170 = dma.done.wait [#allocation12], 4096  }
  0x57   :  { %3171 = vsyncadd [#allocation12], 4294963200  ;;  %v3294_v0 = vld [vmem:[#allocation2] sm:$0xff]  ;;  %v3296_v1 = vld [vmem:[#allocation2 + $0x8] sm:$0xff]  ;;  %v3187_v15 = vmov 0   ;;  %vm3189_vm0 = vmmov 0  }
  0x58   :  { %143 = vadd.xlane.f32.xlu0 %v3294_v0  ;;  %v156_v2 = vmul.f32 %v3294_v0, %v3294_v0  ;;  %v157_v3 = vmul.f32 %v3296_v1, %v3296_v1  ;;  %v2824_v4 = vld [vmem:[#allocation8 + $0xac] ss:$12 sps:$4 sm:$0xff]   ;;  %v2826_v5 = vld [vmem:[#allocation8 + $0xa8] ss:$12 sps:$4 sm:$0xff]   ;;  %v2829_v7 = vld [vmem:[#allocation8 + $0x90] ss:$12 sps:$4 sm:$0xff]   ;;  %427 = vmatprep.mubr.bf16.mxu0 %v3187_v15 }
  0x59   :  { %395 = vmatprep.subr.bf16.mxu0 %v2824_v4  ;;  %v2827_v6 = vld [vmem:[#allocation8 + $0x94] ss:$12 sps:$4 sm:$0xff]   ;;  %v2830_v8 = vld [vmem:[#allocation8 + $0x7c] ss:$12 sps:$4 sm:$0xff]   ;;  %v2832_v9 = vld [vmem:[#allocation8 + $0x78] ss:$12 sps:$4 sm:$0xff]  }
  0x5a   :  { %160 = vadd.xlane.f32.xlu1 %v156_v2  ;;  %396 = vmatpush1.bf16.msra.mxu0 %v2826_v5  ;;  %v2833_v10 = vld [vmem:[#allocation8 + $0x64] ss:$12 sps:$4 sm:$0xff]   ;;  %v2835_v11 = vld [vmem:[#allocation8 + $0x60] ss:$12 sps:$4 sm:$0xff]   ;;  %v2838_v13 = vld [vmem:[#allocation8 + $0x48] ss:$12 sps:$4 sm:$0xff]  }
  0x5b   :  { %397 = vmatprep.subr.bf16.mxu0 %v2827_v6  ;;  %v2836_v12 = vld [vmem:[#allocation8 + $0x4c] ss:$12 sps:$4 sm:$0xff]   ;;  %v2839_v14 = vld [vmem:[#allocation8 + $0x34] ss:$12 sps:$4 sm:$0xff]   ;;  %v2841_v16 = vld [vmem:[#allocation8 + $0x30] ss:$12 sps:$4 sm:$0xff]  }
  0x5c   :  { %145 = vadd.xlane.f32.xlu0 %v3296_v1  ;;  %v2842_v17 = vld [vmem:[#allocation8 + $0x1c] ss:$12 sps:$4 sm:$0xff]   ;;  %v2844_v18 = vld [vmem:[#allocation8 + $0x18] ss:$12 sps:$4 sm:$0xff]   ;;  %v2847_v20 = vld [vmem:[#allocation8] ss:$12 sps:$4 sm:$0xff]  }
  0x5d   :  { %v2845_v19 = vld [vmem:[#allocation8 + $0x4] ss:$12 sps:$4 sm:$0xff]   ;;  %v3307_v22 = vld [vmem:[#allocation2 + $0x18] sm:$0xff]  ;;  %v2850_v27 = vld [vmem:[#allocation8 + $0x80] ss:$12 sps:$4 sm:$0xff]   ;;  %vm519_vm1 = vcmask 261120  }
  0x5e   :  { %162 = vadd.xlane.f32.xlu1 %v157_v3  ;;  %398 = vmatpush1.bf16.msra.mxu0 %v2829_v7  ;;  %v3305_v21 = vld [vmem:[#allocation2 + $0x10] sm:$0xff]  ;;  %v159_v24 = vmul.f32 %v3307_v22, %v3307_v22  ;;  %v2849_v26 = vld [vmem:[#allocation8 + $0x98] ss:$12 sps:$4 sm:$0xff]   ;;  %v2851_v28 = vld [vmem:[#allocation8 + $0x68] ss:$12 sps:$4 sm:$0xff]   ;;  %vm567_vm2 = vcmask 130048  }
  0x5f   :  { %399 = vmatprep.subr.bf16.mxu0 %v2830_v8  ;;  %v158_v23 = vmul.f32 %v3305_v21, %v3305_v21  ;;  %v2848_v25 = vld [vmem:[#allocation8 + $0xb0] ss:$12 sps:$4 sm:$0xff]   ;;  %v2853_v30 = vld [vmem:[#allocation8 + $0x38] ss:$12 sps:$4 sm:$0xff]   ;;  %s3191_s29 = smov 32  }
  0x60   :  { %147 = vadd.xlane.f32.xlu0 %v3305_v21  ;;  %2625 = vmatprep.subr.bf16.mxu1 %v2848_v25  ;;  %v2852_v29 = vld [vmem:[#allocation8 + $0x50] ss:$12 sps:$4 sm:$0xff]  }
  0x61   :  { %2626 = vmatpush3.bf16.msra.mxu1 %v2848_v25  ;;  %v2437_v48 = vld [vmem:[#allocation5] ss:$0 sm:$0xff]  ;;  %v2438_v53 = vld [vmem:[#allocation7] ss:$0 sm:$0xff] }
  0x62   :  { %400 = vmatpush1.bf16.msra.mxu0 %v2832_v9  ;;  %149 = vadd.xlane.f32.xlu1 %v3307_v22 }
  0x63   :  { %401 = vmatprep.subr.bf16.mxu0 %v2833_v10  ;;  %2627 = vmatprep.subr.bf16.mxu1 %v2849_v26 }
  0x64   :  { %164 = vadd.xlane.f32.xlu0 %v158_v23 }
  0x65   :  { %2628 = vmatpush3.bf16.msra.mxu1 %v2849_v26  ;;  %v250_v26 = vld [vmem:[%s3705_s4] sm:$0x7]  ;;  %s3190_s4 = smov 96  }
  0x66   :  { %402 = vmatpush1.bf16.msra.mxu0 %v2835_v11  ;;  %166 = vadd.xlane.f32.xlu1 %v159_v24  ;;  %v3188_v24 = vmov 0.0  }
  0x67   :  { %403 = vmatprep.subr.bf16.mxu0 %v2836_v12  ;;  %2629 = vmatprep.subr.bf16.mxu1 %v2850_v27  ;;  %v2854_v12 = vld [vmem:[#allocation8 + $0x20] ss:$12 sps:$4 sm:$0xff]  }
  0x69   :  { %2630 = vmatpush3.bf16.msra.mxu1 %v2850_v27 }
  0x6a   :  { %404 = vmatpush1.bf16.msra.mxu0 %v2838_v13  ;;  %2631 = vmatprep.subr.bf16.mxu1 %v2851_v28 }
  0x6b   :  { %405 = vmatprep.subr.bf16.mxu0 %v2839_v14 }
  0x6d   :  { %2632 = vmatpush3.bf16.msra.mxu1 %v2851_v28 }
  0x6e   :  { %406 = vmatpush1.bf16.msra.mxu0 %v2841_v16  ;;  %2633 = vmatprep.subr.bf16.mxu1 %v2852_v29  ;;  %v2855_v16 = vld [vmem:[#allocation8 + $0x8] ss:$12 sps:$4 sm:$0xff]  }
  0x6f   :  { %407 = vmatprep.subr.bf16.mxu0 %v2842_v17 }
  0x71   :  { %2634 = vmatpush3.bf16.msra.mxu1 %v2852_v29 }
  0x72   :  { %408 = vmatpush1.bf16.msra.mxu0 %v2844_v18  ;;  %2635 = vmatprep.subr.bf16.mxu1 %v2853_v30 }
  0x73   :  { %409 = vmatprep.subr.bf16.mxu0 %v2845_v19 }
  0x75   :  { %2636 = vmatpush3.bf16.msra.mxu1 %v2853_v30 }
  0x76   :  { %410 = vmatpush1.bf16.msra.mxu0 %v2847_v20  ;;  %2637 = vmatprep.subr.bf16.mxu1 %v2854_v12 }
  0x77   :  { %2651 = vmatprep.subr.bf16.mxu0 %v3188_v24 }
  0x79   :  { %2638 = vmatpush3.bf16.msra.mxu1 %v2854_v12 }
  0x7a   :  { %2639 = vmatprep.subr.bf16.mxu1 %v2855_v16 }
  0x7d   :  { %2640 = vmatpush3.bf16.msra.mxu1 %v2855_v16 }
  0x7e   :  { %2645 = vmatprep.subr.bf16.mxu1 %v3188_v24 }
  0xe1   :  { %v144_v31 = vpop.xlane.xlu0 %143 }
  0xe2   :  { %v152_v32 = vmul.f32 0.0078125, %v144_v31 }
  0xe3   :  { %v161_v33 = vpop.xlane.xlu1 %160 }
  0xe4   :  { %v172_v34 = vmul.f32 %v152_v32, %v152_v32  ;;  %v168_v35 = vmul.f32 0.0078125, %v161_v33  ;;  %v180_v45 = vsub.f32 %v3294_v0, %v152_v32 }
  0xe5   :  { %v146_v36 = vpop.xlane.xlu0 %145 }
  0xe6   :  { %v176_v37 = vsub.f32 %v168_v35, %v172_v34  ;;  %v153_v38 = vmul.f32 0.0078125, %v146_v36 }
  0xe7   :  { %v163_v39 = vpop.xlane.xlu1 %162 }
  0xe8   :  { %v184_v40 = vadd.f32 1e-05, %v176_v37  ;;  %v173_v41 = vmul.f32 %v153_v38, %v153_v38  ;;  %v169_v42 = vmul.f32 0.0078125, %v163_v39  ;;  %v181_v49 = vsub.f32 %v3296_v1, %v153_v38 }
  0xe9   :  { %v148_v58 = vpop.xlane.xlu0 %147 }
  0xea   :  { %2904 = vrsqrt.f32 %v184_v40  ;;  %v177_v43 = vsub.f32 %v169_v42, %v173_v41  ;;  %v154_v60 = vmul.f32 0.0078125, %v148_v58 }
  0xeb   :  { %v150_v59 = vpop.xlane.xlu1 %149 }
  0xec   :  { %v185_v44 = vadd.f32 1e-05, %v177_v43  ;;  %v155_v61 = vmul.f32 0.0078125, %v150_v59  ;;  %v174_v0 = vmul.f32 %v154_v60, %v154_v60  ;;  %v182_v9 = vsub.f32 %v3305_v21, %v154_v60 }
  0xed   :  { %v165_v62 = vpop.xlane.xlu0 %164  ;;  %v252_v21 = vlaneseq }
  0xee   :  { %2906 = vrsqrt.f32 %v185_v44  ;;  %v170_v1 = vmul.f32 0.0078125, %v165_v62  ;;  %v175_v2 = vmul.f32 %v155_v61, %v155_v61  ;;  %v183_v10 = vsub.f32 %v3307_v22, %v155_v61 }
  0xef   :  { %v167_v63 = vpop.xlane.xlu1 %166  ;;  %v3326_v22 = vshrl.u32 %v252_v21, 7 }
  0xf0   :  { %v171_v3 = vmul.f32 0.0078125, %v167_v63  ;;  %v178_v4 = vsub.f32 %v170_v1, %v174_v0 }
  0xf1   :  { %v254_v25 = vsub.s32 0, %v3326_v22  ;;  %v258_v27 = vsub.s32 1, %v3326_v22  ;;  %v262_v41 = vsub.s32 2, %v3326_v22 }
  0xf2   :  { %v179_v5 = vsub.f32 %v171_v3, %v175_v2  ;;  %v186_v6 = vadd.f32 1e-05, %v178_v4 }
  0xf3   :  { %v255_v29 = vrot.slane %v250_v26, %v254_v25  ;;  %v3337_v31 = vrot.slane %v250_v26, %v258_v27  ;;  %v263_v42 = vrot.slane %v250_v26, %v262_v41 }
  0xf4   :  { %v187_v7 = vadd.f32 1e-05, %v179_v5  ;;  %2908 = vrsqrt.f32 %v186_v6 }
  0xf6   :  { %2910 = vrsqrt.f32 %v187_v7 }
  0xf7   :  { %v2905_v46 = vpop.eup %2904 }
  0xf8   :  { %v192_v47 = vmul.f32 %v2905_v46, %v180_v45 }
  0xfa   :  { %v202_v52 = vmul.f32 %v2437_v48, %v192_v47 }
  0xfb   :  { %v2907_v50 = vpop.eup %2906 }
  0xfc   :  { %v193_v51 = vmul.f32 %v2907_v50, %v181_v49  ;;  %v212_v55 = vadd.f32 %v2438_v53, %v202_v52 }
  0xfe   :  { %v203_v54 = vmul.f32 %v2437_v48, %v193_v51 }
 0x100   :  { %v213_v56 = vadd.f32 %v2438_v53, %v203_v54 }
 0x101   :  { %v2909_v8 = vpop.eup %2908 }
 0x102   :  { %v216_v57 = vpack.c.bf16 %v213_v56, %v212_v55  ;;  %v194_v13 = vmul.f32 %v2909_v8, %v182_v9 }
 0x103   :  { %v2911_v11 = vpop.eup %2910 }
 0x104   :  { %428 = vmatmul.mubr.bf16.vlgmr.msra.gmra.mxu0 %v216_v57  ;;  %2641 = vmatprep.mubr.bf16.mxu1 %v216_v57  ;;  %v195_v14 = vmul.f32 %v2911_v11, %v183_v10  ;;  %v204_v17 = vmul.f32 %v2437_v48, %v194_v13 }
 0x105   :  { %437 = vmatprep.mubr.bf16.mxu0 %v3187_v15 }
 0x106   :  { %v205_v18 = vmul.f32 %v2437_v48, %v195_v14  ;;  %v214_v19 = vadd.f32 %v2438_v53, %v204_v17 }
 0x108   :  { %v215_v20 = vadd.f32 %v2438_v53, %v205_v18 }
 0x10a   :  { %v217_v23 = vpack.c.bf16 %v215_v20, %v214_v19 }
 0x10c   :  { %2642 = vmatmul.mubr.bf16.vlgmr.msra.gmra.mxu1 %v217_v23  ;;  %438 = vmatmul.mubr.bf16.gmra.mxu0 %v217_v23 }
 0x10d   :  { %2647 = vmatprep.mubr.msk.bf16.mxu1 %vm3189_vm0, %v3188_v24  ;;  %2653 = vmatprep.mubr.msk.bf16.mxu0 %vm3189_vm0, %v3188_v24 }
 0x1c4   :  { %v429_v28 = vpop.f32.mrf.mxu0 }
 0x1c5   :  { %v430_v33 = vadd.f32 %v429_v28, %v255_v29 }
 0x1c6   :  { %v431_v30 = vpop.f32.mrf.mxu0 }
 0x1c7   :  { %v432_v36 = vadd.f32 %v431_v30, %v3337_v31 }
 0x1c8   :  { %v433_v32 = vpop.f32.mrf.mxu0 }
 0x1c9   :  { %v434_v34 = vadd.f32 %v433_v32, %v255_v29 }
 0x1ca   :  { %v435_v35 = vpop.f32.mrf.mxu0 }
 0x1cb   :  { %v3340_v37 = vpack.c.bf16 %v434_v34, %v430_v33  ;;  %v436_v38 = vadd.f32 %v435_v35, %v3337_v31 }
 0x1cc   :  { %v2643_v43 = vpop.f32.mrf.mxu1  ;;  %v439_v53 = vpop.f32.mrf.mxu0 }
 0x1cd   :  { %v3343_v39 = vpack.c.bf16 %v436_v38, %v432_v36  ;;  %637 = vrot.lane.b32.xlu1 %v3340_v37, %s3190_s4  ;;  %v491_v44 = vadd.f32 %v2643_v43, %v263_v42  ;;  %v440_v55 = vadd.f32 %v439_v53, %v255_v29 }
 0x1ce   :  { %v482_v45 = vpop.f32.mrf.mxu1  ;;  %v3363_v54 = vpop.f32.mrf.mxu0 }
 0x1cf   :  { %640 = vrot.lane.b32.xlu0 %v3343_v39, %s3190_s4  ;;  %v524_v40 = vsel %vm519_vm1, %v3343_v39, 0  ;;  %v483_v47 = vadd.f32 %v482_v45, %v263_v42  ;;  %v3389_v45 = vld [vmem:[#allocation10 + $0x18] sm:$0xff]  }
 0x1d0   :  { %2646 = vmatpush3.bf16.xpose.msra.mxu1 %v524_v40  ;;  %v2644_v46 = vpop.f32.mrf.mxu1  ;;  %v443_v56 = vpop.f32.mrf.mxu0 }
 0x1d1   :  { %2657 = vmatprep.subr.bf16.mxu1 %v3188_v24  ;;  %v494_v48 = vadd.f32 %v2644_v46, %v263_v42  ;;  %v444_v57 = vadd.f32 %v443_v56, %v255_v29  ;;  %v3394_v56 = vld [vmem:[#allocation10 + $0x8] sm:$0xff]  }
 0x1d2   :  { %v485_v49 = vpop.f32.mrf.mxu1 }
 0x1d3   :  { %v3357_v50 = vpack.c.bf16 %v494_v48, %v491_v44  ;;  %v486_v51 = vadd.f32 %v485_v49, %v263_v42  ;;  %v3365_v58 = vpack.c.bf16 %v444_v57, %v440_v55 }
 0x1d5   :  { %v3359_v52 = vpack.c.bf16 %v486_v51, %v483_v47 }
 0x1d7   :  { %2648 = vmatmul.mubr.msk.bf16.vlgmr.msra.gmra.mxu1 %vm519_vm1, %v3340_v37  ;;  %2652 = vmatpush3.bf16.msra.mxu0 %v3359_v52 }
 0x1d8   :  { %2659 = vmatprep.mubr.msk.bf16.mxu1 %vm3189_vm0, %v3188_v24  ;;  %2663 = vmatprep.subr.bf16.mxu0 %v3188_v24 }
 0x23f   :  { %v638_v61 = vpop.permute.xlu1 %637 }
 0x241   :  { %v641_v59 = vpop.permute.xlu0 %640 }
 0x242   :  { %v646_v60 = vsel %vm519_vm1, %v641_v59, 0  ;;  %v3398_v59 = vld [vmem:[#allocation10] sm:$0xff]  }
 0x243   :  { %2658 = vmatpush3.bf16.xpose.msra.mxu1 %v646_v60  ;;  %v3405_v60 = vld [vmem:[#allocation10 + $0x10] sm:$0xff]  }
 0x244   :  { %2669 = vmatprep.subr.bf16.mxu1 %v3188_v24 }
 0x24a   :  { %2660 = vmatmul.mubr.msk.bf16.vlgmr.msra.gmra.mxu1 %vm519_vm1, %v638_v61  ;;  %v3409_v61 = vpop.f32.mrf.mxu0 }
 0x24b   :  { %2673 = vmatprep.mubr.msk.bf16.mxu1 %vm3189_vm0, %v3188_v24  ;;  %2670 = vmatpush3.bf16.msra.mxu1 %v3389_v45 }
 0x24c   :  { %2671 = vmatprep.subr.bf16.mxu1 %v3188_v24 }
 0x24f   :  { %2672 = vmatpush3.bf16.msra.mxu1 %v3405_v60 }
 0x250   :  { %2685 = vmatprep.subr.bf16.mxu1 %v3188_v24 }
 0x297   :  { %v560_v62 = vpop.f32.mrf.mxu1 }
 0x298   :  { %v568_v63 = vsel %vm567_vm2, %v560_v62, -inf }
 0x299   :  { %569 = vmax.xlane.f32.xlu1 %v568_v63  ;;  %v2649_v0 = vpop.f32.mrf.mxu1 }
 0x29b   :  { %v563_v1 = vpop.f32.mrf.mxu1 }
 0x29c   :  { %v571_v2 = vsel %vm567_vm2, %v563_v1, -inf }
 0x29d   :  { %572 = vmax.xlane.f32.xlu0 %v571_v2  ;;  %v2650_v3 = vpop.f32.mrf.mxu1 }
 0x30a   :  { %v682_v4 = vpop.f32.mrf.mxu1 }
 0x30b   :  { %v689_v5 = vsel %vm567_vm2, %v682_v4, -inf }
 0x30c   :  { %690 = vmax.xlane.f32.xlu0 %v689_v5  ;;  %v2661_v6 = vpop.f32.mrf.mxu1 }
 0x30e   :  { %v685_v7 = vpop.f32.mrf.mxu1 }
 0x30f   :  { %v692_v8 = vsel %vm567_vm2, %v685_v7, -inf }
 0x310   :  { %693 = vmax.xlane.f32.xlu1 %v692_v8  ;;  %v2662_v9 = vpop.f32.mrf.mxu1 }
 0x322   :  { %v570_v10 = vpop.xlane.xlu1 %569 }
 0x323   :  { %v574_v11 = vsub.f32 %v560_v62, %v570_v10 }
 0x325   :  { %v576_v12 = vmul.f32 1.442695, %v574_v11 }
 0x326   :  { %v573_v13 = vpop.xlane.xlu0 %572 }
 0x327   :  { %2912 = vpow2.f32 %v576_v12  ;;  %v575_v14 = vsub.f32 %v563_v1, %v573_v13 }
 0x329   :  { %v578_v16 = vmul.f32 1.442695, %v575_v14 }
 0x32b   :  { %2914 = vpow2.f32 %v578_v16 }
 0x334   :  { %v2913_v17 = vpop.eup %2912 }
 0x335   :  { %v580_v18 = vsel %vm567_vm2, %v2913_v17, 0.0 }
 0x336   :  { %581 = vadd.xlane.f32.xlu0 %v580_v18 }
 0x338   :  { %v2915_v19 = vpop.eup %2914 }
 0x339   :  { %v583_v20 = vsel %vm567_vm2, %v2915_v19, 0.0 }
 0x33a   :  { %584 = vadd.xlane.f32.xlu1 %v583_v20 }
 0x395   :  { %v691_v23 = vpop.xlane.xlu0 %690 }
 0x396   :  { %v695_v21 = vsub.f32 %v682_v4, %v691_v23 }
 0x398   :  { %v697_v26 = vmul.f32 1.442695, %v695_v21 }
 0x399   :  { %v694_v28 = vpop.xlane.xlu1 %693 }
 0x39a   :  { %2916 = vpow2.f32 %v697_v26  ;;  %v696_v29 = vsub.f32 %v685_v7, %v694_v28 }
 0x39c   :  { %v699_v30 = vmul.f32 1.442695, %v696_v29 }
 0x39e   :  { %2918 = vpow2.f32 %v699_v30 }
 0x3a7   :  { %v2917_v32 = vpop.eup %2916 }
 0x3a8   :  { %v701_v33 = vsel %vm567_vm2, %v2917_v32, 0.0 }
 0x3a9   :  { %702 = vadd.xlane.f32.xlu0 %v701_v33 }
 0x3ab   :  { %v2919_v34 = vpop.eup %2918 }
 0x3ac   :  { %v704_v35 = vsel %vm567_vm2, %v2919_v34, 0.0 }
 0x3ad   :  { %705 = vadd.xlane.f32.xlu1 %v704_v35 }
 0x3be   :  { %875 = vrot.lane.b32.xlu1 %v3343_v39, %s3184_s0 }
 0x3bf   :  { %713 = vrot.lane.b32.xlu0 %v3359_v52, %s3190_s4  ;;  %v582_v36 = vpop.xlane.xlu0 %581 }
 0x3c0   :  { %2920 = vrcp.f32 %v582_v36 }
 0x3c2   :  { %873 = vrot.lane.b32.xlu1 %v3340_v37, %s3184_s0 }
 0x3c3   :  { %v585_v38 = vpop.xlane.xlu1 %584 }
 0x3c4   :  { %2922 = vrcp.f32 %v585_v38 }
 0x3cd   :  { %v2921_v40 = vpop.eup %2920 }
 0x3ce   :  { %v588_v42 = vmul.f32 %v2921_v40, %v2913_v17 }
 0x3d1   :  { %v2923_v41 = vpop.eup %2922 }
 0x3d2   :  { %v589_v43 = vmul.f32 %v2923_v41, %v2915_v19 }
 0x3d4   :  { %v590_v44 = vpack.c.bf16 %v589_v43, %v588_v42 }
 0x3d6   :  { %2654 = vmatmul.mubr.msk.bf16.vlgmr.msra.gmra.mxu0 %vm567_vm2, %v590_v44 }
 0x3d7   :  { %2665 = vmatprep.mubr.msk.bf16.mxu0 %vm3189_vm0, %v3188_v24 }
 0x432   :  { %v703_v46 = vpop.xlane.xlu0 %702 }
 0x433   :  { %2924 = vrcp.f32 %v703_v46 }
 0x436   :  { %v714_v47 = vpop.permute.xlu0 %713  ;;  %v706_v48 = vpop.xlane.xlu1 %705 }
 0x437   :  { %2926 = vrcp.f32 %v706_v48  ;;  %2664 = vmatpush3.bf16.msra.mxu0 %v714_v47 }
 0x438   :  { %2677 = vmatprep.subr.bf16.mxu0 %v3188_v24 }
 0x43a   :  { %v876_v5 = vpop.permute.xlu1 %875 }
 0x43b   :  { %v881_v9 = vsel %vm519_vm1, %v876_v5, 0 }
 0x43e   :  { %v874_v10 = vpop.permute.xlu1 %873 }
 0x440   :  { %v2925_v49 = vpop.eup %2924 }
 0x441   :  { %v709_v53 = vmul.f32 %v2925_v49, %v2917_v32 }
 0x444   :  { %v2927_v51 = vpop.eup %2926 }
 0x445   :  { %v710_v55 = vmul.f32 %v2927_v51, %v2919_v34 }
 0x447   :  { %v711_v57 = vpack.c.bf16 %v710_v55, %v709_v53 }
 0x449   :  { %2666 = vmatmul.mubr.msk.bf16.vlgmr.msra.gmra.mxu0 %vm567_vm2, %v711_v57  ;;  %v3449_v57 = vld [vmem:[#allocation10 + $0x28] sm:$0xff]  }
 0x44a   :  { %2678 = vmatpush3.bf16.msra.mxu0 %v3394_v56  ;;  %2681 = vmatprep.mubr.msk.bf16.mxu0 %vm3189_vm0, %v3188_v24 }
 0x44b   :  { %2679 = vmatprep.subr.bf16.mxu0 %v3188_v24 }
 0x44e   :  { %2680 = vmatpush3.bf16.msra.mxu0 %v3398_v59 }
 0x44f   :  { %2691 = vmatprep.subr.bf16.mxu0 %v3188_v24 }
 0x496   :  { %v628_v62 = vpop.f32.mrf.mxu0 }
 0x498   :  { %v2655_v63 = vpop.f32.mrf.mxu0 }
 0x49a   :  { %v631_v0 = vpop.f32.mrf.mxu0 }
 0x49b   :  { %v635_v1 = vpack.c.bf16 %v631_v0, %v628_v62  ;;  %v3453_v62 = vld [vmem:[#allocation10 + $0x20] sm:$0xff]  }
 0x49c   :  { %v2656_v2 = vpop.f32.mrf.mxu0 }
 0x49d   :  { %2682 = vmatmul.mubr.msk.bf16.vlgmr.msra.gmra.mxu0 %vm519_vm1, %v635_v1 }
 0x49e   :  { %2693 = vmatprep.mubr.msk.bf16.mxu0 %vm3189_vm0, %v3188_v24 }
 0x509   :  { %v753_v3 = vpop.f32.mrf.mxu0 }
 0x50b   :  { %v2667_v4 = vpop.f32.mrf.mxu0 }
 0x50d   :  { %v756_v6 = vpop.f32.mrf.mxu0 }
 0x50e   :  { %v760_v7 = vpack.c.bf16 %v756_v6, %v753_v3 }
 0x50f   :  { %v2668_v8 = vpop.f32.mrf.mxu0 }
 0x510   :  { %2674 = vmatmul.mubr.msk.bf16.vlgmr.msra.gmra.mxu1 %vm519_vm1, %v760_v7 }
 0x511   :  { %2686 = vmatpush3.bf16.xpose.msra.mxu1 %v881_v9  ;;  %2687 = vmatprep.mubr.msk.bf16.mxu1 %vm3189_vm0, %v3188_v24 }
 0x512   :  { %2697 = vmatprep.subr.bf16.mxu1 %v3188_v24 }
 0x518   :  { %2688 = vmatmul.mubr.msk.bf16.vlgmr.msra.gmra.mxu1 %vm519_vm1, %v874_v10 }
 0x519   :  { %2701 = vmatprep.mubr.msk.bf16.mxu1 %vm3189_vm0, %v3188_v24  ;;  %2698 = vmatpush3.bf16.msra.mxu1 %v3449_v57 }
 0x51a   :  { %2699 = vmatprep.subr.bf16.mxu1 %v3188_v24 }
 0x51d   :  { %2700 = vmatpush3.bf16.msra.mxu1 %v3453_v62 }
 0x51e   :  { %2711 = vmatprep.subr.bf16.mxu1 %v3188_v24 }
 0x55d   :  { %v3422_v11 = vpop.f32.mrf.mxu0 }
 0x55f   :  { %v2683_v12 = vpop.f32.mrf.mxu0 }
 0x561   :  { %v3424_v13 = vpop.f32.mrf.mxu0 }
 0x563   :  { %v2684_v14 = vpop.f32.mrf.mxu0 }
 0x5d0   :  { %v3426_v16 = vpop.f32.mrf.mxu1 }
 0x5d2   :  { %v2675_v17 = vpop.f32.mrf.mxu1 }
 0x5d4   :  { %v3428_v18 = vpop.f32.mrf.mxu1 }
 0x5d6   :  { %v2676_v19 = vpop.f32.mrf.mxu1 }
 0x5d8   :  { %v917_v20 = vpop.f32.mrf.mxu1 }
 0x5d9   :  { %v924_v23 = vsel %vm567_vm2, %v917_v20, -inf }
 0x5da   :  { %925 = vmax.xlane.f32.xlu1 %v924_v23  ;;  %v2689_v21 = vpop.f32.mrf.mxu1 }
 0x5dc   :  { %v920_v26 = vpop.f32.mrf.mxu1 }
 0x5dd   :  { %v927_v28 = vsel %vm567_vm2, %v920_v26, -inf }
 0x5de   :  { %928 = vmax.xlane.f32.xlu0 %v927_v28  ;;  %v2690_v29 = vpop.f32.mrf.mxu1 }
 0x5df   :  { %v442_v29 = vadd.f32 %v3363_v54, %v3337_v31 }
 0x5eb   :  { %947 = vrot.lane.b32.xlu1 %v3359_v52, %s3184_s0 }
 0x5ef   :  { %1053 = vrot.lane.b32.xlu1 %v3340_v37, %s3191_s29 }
 0x663   :  { %v926_v30 = vpop.xlane.xlu1 %925 }
 0x664   :  { %v930_v32 = vsub.f32 %v917_v20, %v926_v30  ;;  %v446_v30 = vadd.f32 %v3409_v61, %v3337_v31  ;;  %v870_v31 = vadd.f32 %v3424_v13, %v3428_v18 }
 0x666   :  { %v932_v33 = vmul.f32 1.442695, %v930_v32  ;;  %v3468_v32 = vpack.c.bf16 %v446_v30, %v442_v29 }
 0x667   :  { %v948_v34 = vpop.permute.xlu1 %947  ;;  %v929_v35 = vpop.xlane.xlu0 %928 }
 0x668   :  { %2928 = vpow2.f32 %v932_v33  ;;  %v931_v36 = vsub.f32 %v920_v26, %v929_v35  ;;  %2692 = vmatpush3.bf16.msra.mxu0 %v948_v34  ;;  %v867_v33 = vadd.f32 %v3422_v11, %v3426_v16 }
 0x669   :  { %2705 = vmatprep.subr.bf16.mxu0 %v3188_v24 }
 0x66a   :  { %v934_v38 = vmul.f32 1.442695, %v931_v36 }
 0x66c   :  { %2930 = vpow2.f32 %v934_v38 }
 0x675   :  { %v2929_v40 = vpop.eup %2928 }
 0x676   :  { %v936_v41 = vsel %vm567_vm2, %v2929_v40, 0.0 }
 0x677   :  { %937 = vadd.xlane.f32.xlu0 %v936_v41 }
 0x679   :  { %v2931_v42 = vpop.eup %2930 }
 0x67a   :  { %v939_v43 = vsel %vm567_vm2, %v2931_v42, 0.0 }
 0x67b   :  { %940 = vadd.xlane.f32.xlu0 %v939_v43 }
 0x691   :  { %1055 = vrot.lane.b32.xlu0 %v3343_v39, %s3191_s29  ;;  %v1054_v39 = vpop.permute.xlu1 %1053 }
 0x700   :  { %v938_v37 = vpop.xlane.xlu0 %937 }
 0x701   :  { %2932 = vrcp.f32 %v938_v37  ;;  %v1237_v37 = vsel %vm519_vm1, %v3468_v32, 0 }
 0x704   :  { %v941_v44 = vpop.xlane.xlu0 %940 }
 0x705   :  { %2934 = vrcp.f32 %v941_v44 }
 0x708   :  { %v1056_v51 = vpop.permute.xlu0 %1055 }
 0x709   :  { %v1061_v55 = vsel %vm519_vm1, %v1056_v51, 0 }
 0x70e   :  { %v2933_v46 = vpop.eup %2932 }
 0x70f   :  { %v944_v48 = vmul.f32 %v2933_v46, %v2929_v40  ;;  %v3484_v40 = vld [vmem:[#allocation10 + $0x38] sm:$0xff]  }
 0x712   :  { %v2935_v47 = vpop.eup %2934 }
 0x713   :  { %v945_v49 = vmul.f32 %v2935_v47, %v2931_v42 }
 0x715   :  { %v946_v53 = vpack.c.bf16 %v945_v49, %v944_v48  ;;  %v3508_v48 = vld [vmem:[#allocation10 + $0x30] sm:$0xff]  }
 0x717   :  { %2694 = vmatmul.mubr.msk.bf16.vlgmr.msra.gmra.mxu0 %vm567_vm2, %v946_v53 }
 0x718   :  { %2706 = vmatpush3.bf16.xpose.msra.mxu0 %v1061_v55  ;;  %2707 = vmatprep.mubr.msk.bf16.mxu0 %vm3189_vm0, %v3188_v24 }
 0x719   :  { %2717 = vmatprep.subr.bf16.mxu0 %v3188_v24 }
 0x71f   :  { %2708 = vmatmul.mubr.msk.bf16.vlgmr.msra.gmra.mxu0 %vm519_vm1, %v1054_v39 }
 0x720   :  { %2721 = vmatprep.mubr.msk.bf16.mxu0 %vm3189_vm0, %v3188_v24  ;;  %2718 = vmatpush3.bf16.msra.mxu0 %v3484_v40 }
 0x721   :  { %2719 = vmatprep.subr.bf16.mxu0 %v3188_v24 }
 0x724   :  { %2720 = vmatpush3.bf16.msra.mxu0 %v3508_v48 }
 0x725   :  { %2731 = vmatprep.subr.bf16.mxu0 %v3188_v24 }
 0x7d7   :  { %v987_v63 = vpop.f32.mrf.mxu0 }
 0x7d9   :  { %v2695_v0 = vpop.f32.mrf.mxu0 }
 0x7db   :  { %v990_v1 = vpop.f32.mrf.mxu0 }
 0x7dc   :  { %v994_v2 = vpack.c.bf16 %v990_v1, %v987_v63 }
 0x7dd   :  { %v2696_v3 = vpop.f32.mrf.mxu0 }
 0x7de   :  { %2702 = vmatmul.mubr.msk.bf16.vlgmr.msra.gmra.mxu1 %vm519_vm1, %v994_v2 }
 0x7df   :  { %v1097_v4 = vpop.f32.mrf.mxu0  ;;  %2713 = vmatprep.mubr.msk.bf16.mxu1 %vm3189_vm0, %v3188_v24 }
 0x7e0   :  { %v1104_v5 = vsel %vm567_vm2, %v1097_v4, -inf }
 0x7e1   :  { %1105 = vmax.xlane.f32.xlu1 %v1104_v5  ;;  %v2709_v6 = vpop.f32.mrf.mxu0 }
 0x7e3   :  { %v1100_v7 = vpop.f32.mrf.mxu0 }
 0x7e4   :  { %v1107_v8 = vsel %vm567_vm2, %v1100_v7, -inf }
 0x7e5   :  { %1108 = vmax.xlane.f32.xlu0 %v1107_v8  ;;  %v2710_v9 = vpop.f32.mrf.mxu0 }
 0x86a   :  { %v1106_v10 = vpop.xlane.xlu1 %1105 }
 0x86b   :  { %v1110_v12 = vsub.f32 %v1097_v4, %v1106_v10 }
 0x86d   :  { %v1112_v14 = vmul.f32 1.442695, %v1110_v12 }
 0x86e   :  { %v1109_v17 = vpop.xlane.xlu0 %1108 }
 0x86f   :  { %2936 = vpow2.f32 %v1112_v14  ;;  %v1111_v19 = vsub.f32 %v1100_v7, %v1109_v17 }
 0x871   :  { %v1114_v20 = vmul.f32 1.442695, %v1111_v19 }
 0x873   :  { %2938 = vpow2.f32 %v1114_v20 }
 0x87c   :  { %v2937_v23 = vpop.eup %2936 }
 0x87d   :  { %v1116_v21 = vsel %vm567_vm2, %v2937_v23, 0.0 }
 0x87e   :  { %1117 = vadd.xlane.f32.xlu0 %v1116_v21 }
 0x880   :  { %v2939_v26 = vpop.eup %2938 }
 0x881   :  { %v1119_v28 = vsel %vm567_vm2, %v2939_v26, 0.0 }
 0x882   :  { %1120 = vadd.xlane.f32.xlu1 %v1119_v28 }
 0x893   :  { %1352 = vrot.lane.b32.xlu1 %v3468_v32, %s3190_s4 }
 0x894   :  { %1127 = vrot.lane.b32.xlu0 %v3359_v52, %s3191_s29 }
 0x897   :  { %1349 = vrot.lane.b32.xlu1 %v3365_v58, %s3190_s4 }
 0x89e   :  { %v1044_v34 = vpop.f32.mrf.mxu1 }
 0x89f   :  { %v3478_v35 = vadd.f32 %v1044_v34, %v867_v33 }
 0x8a0   :  { %v2703_v54 = vpop.f32.mrf.mxu1 }
 0x8a2   :  { %v1047_v61 = vpop.f32.mrf.mxu1 }
 0x8a3   :  { %v3482_v36 = vadd.f32 %v1047_v61, %v870_v31 }
 0x8a4   :  { %v2704_v38 = vpop.f32.mrf.mxu1 }
 0x907   :  { %v1118_v52 = vpop.xlane.xlu0 %1117 }
 0x908   :  { %2940 = vrcp.f32 %v1118_v52 }
 0x90b   :  { %v1121_v11 = vpop.xlane.xlu1 %1120  ;;  %v1128_v16 = vpop.permute.xlu0 %1127 }
 0x90c   :  { %2942 = vrcp.f32 %v1121_v11  ;;  %2712 = vmatpush3.bf16.msra.mxu1 %v1128_v16 }
 0x90d   :  { %2725 = vmatprep.subr.bf16.mxu1 %v3188_v24 }
 0x90f   :  { %v1353_v44 = vpop.permute.xlu1 %1352 }
 0x910   :  { %v1358_v46 = vsel %vm519_vm1, %v1353_v44, 0 }
 0x913   :  { %v1350_v47 = vpop.permute.xlu1 %1349 }
 0x915   :  { %v2941_v41 = vpop.eup %2940 }
 0x916   :  { %v1124_v18 = vmul.f32 %v2941_v41, %v2937_v23 }
 0x919   :  { %v2943_v13 = vpop.eup %2942 }
 0x91a   :  { %v1125_v42 = vmul.f32 %v2943_v13, %v2939_v26 }
 0x91c   :  { %v1126_v43 = vpack.c.bf16 %v1125_v42, %v1124_v18 }
 0x91e   :  { %2714 = vmatmul.mubr.msk.bf16.vlgmr.msra.gmra.mxu1 %vm567_vm2, %v1126_v43 }
 0x91f   :  { %2726 = vmatpush3.bf16.xpose.msra.mxu1 %v1237_v37  ;;  %2727 = vmatprep.mubr.msk.bf16.mxu1 %vm3189_vm0, %v3188_v24 }
 0x920   :  { %2737 = vmatprep.subr.bf16.mxu1 %v3188_v24 }
 0x926   :  { %2728 = vmatmul.mubr.msk.bf16.vlgmr.msra.gmra.mxu1 %vm519_vm1, %v3365_v58 }
 0x927   :  { %2738 = vmatpush3.bf16.xpose.msra.mxu1 %v1358_v46  ;;  %2739 = vmatprep.mubr.msk.bf16.mxu1 %vm3189_vm0, %v3188_v24 }
 0x928   :  { %2749 = vmatprep.subr.bf16.mxu1 %v3188_v24 }
 0x92e   :  { %2740 = vmatmul.mubr.msk.bf16.vlgmr.msra.gmra.mxu1 %vm519_vm1, %v1350_v47 }
 0x92f   :  { %2750 = vmatpush3.bf16.msra.mxu1 %v3389_v45  ;;  %2753 = vmatprep.mubr.msk.bf16.mxu1 %vm3189_vm0, %v3188_v24 }
 0x930   :  { %2751 = vmatprep.subr.bf16.mxu1 %v3188_v24 }
 0x933   :  { %2752 = vmatpush3.bf16.msra.mxu1 %v3405_v60 }
 0x934   :  { %2765 = vmatprep.subr.bf16.mxu1 %v3188_v24 }
 0x9de   :  { %v1167_v49 = vpop.f32.mrf.mxu1 }
 0x9e0   :  { %v2715_v51 = vpop.f32.mrf.mxu1 }
 0x9e2   :  { %v1170_v53 = vpop.f32.mrf.mxu1 }
 0x9e3   :  { %v1174_v55 = vpack.c.bf16 %v1170_v53, %v1167_v49 }
 0x9e4   :  { %v2716_v45 = vpop.f32.mrf.mxu1 }
 0x9e5   :  { %2722 = vmatmul.mubr.msk.bf16.vlgmr.msra.gmra.mxu0 %vm519_vm1, %v1174_v55 }
 0x9e6   :  { %2732 = vmatpush3.bf16.msra.mxu0 %v3357_v50  ;;  %v1273_v39 = vpop.f32.mrf.mxu1  ;;  %2733 = vmatprep.mubr.msk.bf16.mxu0 %vm3189_vm0, %v3188_v24 }
 0x9e7   :  { %v1280_v60 = vsel %vm567_vm2, %v1273_v39, -inf  ;;  %2743 = vmatprep.subr.bf16.mxu0 %v3188_v24 }
 0x9e8   :  { %1281 = vmax.xlane.f32.xlu1 %v1280_v60  ;;  %v2729_v63 = vpop.f32.mrf.mxu1 }
 0x9ea   :  { %v1276_v0 = vpop.f32.mrf.mxu1 }
 0x9eb   :  { %v1283_v1 = vsel %vm567_vm2, %v1276_v0, -inf }
 0x9ec   :  { %1284 = vmax.xlane.f32.xlu0 %v1283_v1  ;;  %v2730_v2 = vpop.f32.mrf.mxu1 }
 0x9ee   :  { %v1394_v3 = vpop.f32.mrf.mxu1 }
 0x9ef   :  { %v1401_v4 = vsel %vm567_vm2, %v1394_v3, -inf }
 0x9f0   :  { %1402 = vmax.xlane.f32.xlu0 %v1401_v4  ;;  %v2741_v5 = vpop.f32.mrf.mxu1 }
 0x9f2   :  { %v1397_v6 = vpop.f32.mrf.mxu1 }
 0x9f3   :  { %v1404_v7 = vsel %vm567_vm2, %v1397_v6, -inf }
 0x9f4   :  { %1405 = vmax.xlane.f32.xlu0 %v1404_v7  ;;  %v2742_v8 = vpop.f32.mrf.mxu1 }
 0xa71   :  { %v1282_v9 = vpop.xlane.xlu1 %1281 }
 0xa72   :  { %v1286_v10 = vsub.f32 %v1273_v39, %v1282_v9 }
 0xa74   :  { %v1288_v12 = vmul.f32 1.442695, %v1286_v10 }
 0xa75   :  { %v1285_v14 = vpop.xlane.xlu0 %1284 }
 0xa76   :  { %2944 = vpow2.f32 %v1288_v12  ;;  %v1287_v17 = vsub.f32 %v1276_v0, %v1285_v14 }
 0xa78   :  { %v1290_v19 = vmul.f32 1.442695, %v1287_v17 }
 0xa79   :  { %v1403_v20 = vpop.xlane.xlu0 %1402 }
 0xa7a   :  { %2946 = vpow2.f32 %v1290_v19  ;;  %v1407_v23 = vsub.f32 %v1394_v3, %v1403_v20 }
 0xa7c   :  { %v1409_v21 = vmul.f32 1.442695, %v1407_v23 }
 0xa7d   :  { %v1406_v26 = vpop.xlane.xlu0 %1405 }
 0xa7e   :  { %2948 = vpow2.f32 %v1409_v21  ;;  %v1408_v28 = vsub.f32 %v1397_v6, %v1406_v26 }
 0xa80   :  { %v1411_v29 = vmul.f32 1.442695, %v1408_v28 }
 0xa82   :  { %2950 = vpow2.f32 %v1411_v29 }
 0xa83   :  { %v2945_v30 = vpop.eup %2944 }
 0xa84   :  { %v1292_v33 = vsel %vm567_vm2, %v2945_v30, 0.0 }
 0xa85   :  { %1293 = vadd.xlane.f32.xlu1 %v1292_v33 }
 0xa87   :  { %v2947_v34 = vpop.eup %2946 }
 0xa88   :  { %v1295_v54 = vsel %vm567_vm2, %v2947_v34, 0.0 }
 0xa89   :  { %1296 = vadd.xlane.f32.xlu0 %v1295_v54 }
 0xa8b   :  { %v2949_v31 = vpop.eup %2948 }
 0xa8c   :  { %v1413_v61 = vsel %vm567_vm2, %v2949_v31, 0.0 }
 0xa8d   :  { %1414 = vadd.xlane.f32.xlu1 %v1413_v61 }
 0xa8f   :  { %v2951_v38 = vpop.eup %2950 }
 0xa90   :  { %v1416_v52 = vsel %vm567_vm2, %v2951_v38, 0.0 }
 0xa91   :  { %1417 = vadd.xlane.f32.xlu0 %v1416_v52 }
 0xa9e   :  { %1425 = vrot.lane.b32.xlu1 %v3357_v50, %s3190_s4 }
 0xaa2   :  { %1561 = vrot.lane.b32.xlu1 %v3365_v58, %s3184_s0 }
 0xaa5   :  { %v1224_v11 = vpop.f32.mrf.mxu0 }
 0xaa6   :  { %v3530_v16 = vadd.f32 %v1224_v11, %v3478_v35 }
 0xaa7   :  { %v2723_v41 = vpop.f32.mrf.mxu0  ;;  %1563 = vrot.lane.b32.xlu0 %v3468_v32, %s3184_s0 }
 0xaa9   :  { %v1227_v13 = vpop.f32.mrf.mxu0 }
 0xaaa   :  { %v3535_v18 = vadd.f32 %v1227_v13, %v3482_v36 }
 0xaab   :  { %v2724_v42 = vpop.f32.mrf.mxu0 }
 0xb0e   :  { %v1294_v43 = vpop.xlane.xlu1 %1293 }
 0xb0f   :  { %2952 = vrcp.f32 %v1294_v43 }
 0xb12   :  { %v1297_v37 = vpop.xlane.xlu0 %1296 }
 0xb13   :  { %2954 = vrcp.f32 %v1297_v37 }
 0xb16   :  { %v1415_v44 = vpop.xlane.xlu1 %1414 }
 0xb17   :  { %2956 = vrcp.f32 %v1415_v44 }
 0xb1a   :  { %v1418_v46 = vpop.xlane.xlu0 %1417  ;;  %v1426_v55 = vpop.permute.xlu1 %1425 }
 0xb1b   :  { %2958 = vrcp.f32 %v1418_v46 }
 0xb1c   :  { %v2953_v47 = vpop.eup %2952 }
 0xb1d   :  { %v1300_v49 = vmul.f32 %v2953_v47, %v2945_v30 }
 0xb1e   :  { %v1564_v6 = vpop.permute.xlu0 %1563  ;;  %v1562_v10 = vpop.permute.xlu1 %1561 }
 0xb20   :  { %v2955_v35 = vpop.eup %2954 }
 0xb21   :  { %v1301_v51 = vmul.f32 %v2955_v35, %v2947_v34 }
 0xb23   :  { %v1302_v53 = vpack.c.bf16 %v1301_v51, %v1300_v49 }
 0xb24   :  { %v2957_v45 = vpop.eup %2956 }
 0xb25   :  { %2734 = vmatmul.mubr.msk.bf16.vlgmr.msra.gmra.mxu0 %vm567_vm2, %v1302_v53  ;;  %v1421_v39 = vmul.f32 %v2957_v45, %v2949_v31 }
 0xb26   :  { %2744 = vmatpush3.bf16.msra.mxu0 %v1426_v55  ;;  %2745 = vmatprep.mubr.msk.bf16.mxu0 %vm3189_vm0, %v3188_v24 }
 0xb27   :  { %2757 = vmatprep.subr.bf16.mxu0 %v3188_v24 }
 0xb28   :  { %v2959_v36 = vpop.eup %2958 }
 0xb29   :  { %v1422_v60 = vmul.f32 %v2959_v36, %v2951_v38 }
 0xb2b   :  { %v1423_v63 = vpack.c.bf16 %v1422_v60, %v1421_v39 }
 0xb2d   :  { %2746 = vmatmul.mubr.msk.bf16.vlgmr.msra.gmra.mxu0 %vm567_vm2, %v1423_v63 }
 0xb2e   :  { %2758 = vmatpush3.bf16.msra.mxu0 %v3394_v56  ;;  %2761 = vmatprep.mubr.msk.bf16.mxu0 %vm3189_vm0, %v3188_v24 }
 0xb2f   :  { %2759 = vmatprep.subr.bf16.mxu0 %v3188_v24 }
 0xb32   :  { %2760 = vmatpush3.bf16.msra.mxu0 %v3398_v59  ;;  %v1569_v59 = vsel %vm519_vm1, %v1564_v6, 0 }
 0xb33   :  { %2771 = vmatprep.subr.bf16.mxu0 %v3188_v24 }
 0xbe5   :  { %v1340_v0 = vpop.f32.mrf.mxu0 }
 0xbe7   :  { %v2735_v1 = vpop.f32.mrf.mxu0 }
 0xbe9   :  { %v1343_v2 = vpop.f32.mrf.mxu0 }
 0xbea   :  { %v1347_v3 = vpack.c.bf16 %v1343_v2, %v1340_v0 }
 0xbeb   :  { %v2736_v4 = vpop.f32.mrf.mxu0 }
 0xbec   :  { %2762 = vmatmul.mubr.msk.bf16.vlgmr.msra.gmra.mxu0 %vm519_vm1, %v1347_v3 }
 0xbed   :  { %v1465_v5 = vpop.f32.mrf.mxu0  ;;  %2773 = vmatprep.mubr.msk.bf16.mxu0 %vm3189_vm0, %v3188_v24 }
 0xbef   :  { %v2747_v56 = vpop.f32.mrf.mxu0 }
 0xbf1   :  { %v1468_v7 = vpop.f32.mrf.mxu0 }
 0xbf2   :  { %v1472_v8 = vpack.c.bf16 %v1468_v7, %v1465_v5 }
 0xbf3   :  { %v2748_v9 = vpop.f32.mrf.mxu0 }
 0xbf4   :  { %2754 = vmatmul.mubr.msk.bf16.vlgmr.msra.gmra.mxu1 %vm519_vm1, %v1472_v8 }
 0xbf5   :  { %2766 = vmatpush3.bf16.xpose.msra.mxu1 %v1569_v59  ;;  %2767 = vmatprep.mubr.msk.bf16.mxu1 %vm3189_vm0, %v3188_v24 }
 0xbf6   :  { %2777 = vmatprep.subr.bf16.mxu1 %v3188_v24 }
 0xbfc   :  { %2768 = vmatmul.mubr.msk.bf16.vlgmr.msra.gmra.mxu1 %vm519_vm1, %v1562_v10  ;;  %v3599_v10 = vld [vmem:[%s3707_s6] ss:$0 sm:$0xff] }
 0xbfd   :  { %2778 = vmatpush3.bf16.msra.mxu1 %v3449_v57  ;;  %2781 = vmatprep.mubr.msk.bf16.mxu1 %vm3189_vm0, %v3188_v24 }
 0xbfe   :  { %2779 = vmatprep.subr.bf16.mxu1 %v3188_v24 }
 0xc01   :  { %2780 = vmatpush3.bf16.msra.mxu1 %v3453_v62 }
 0xc02   :  { %2791 = vmatprep.subr.bf16.mxu1 %v3188_v24 }
 0xcac   :  { %v1554_v12 = vpop.f32.mrf.mxu0 }
 0xcae   :  { %v2763_v14 = vpop.f32.mrf.mxu0 }
 0xcaf   :  { %v1904_v14 = vadd.f32 %v3599_v10, %v3530_v16 }
 0xcb0   :  { %v1557_v17 = vpop.f32.mrf.mxu0 }
 0xcb2   :  { %v2764_v19 = vpop.f32.mrf.mxu0 }
 0xcb3   :  { %v3000_v19 = vld [vmem:[#allocation2] sm:$0xff] }
 0xcb4   :  { %v1510_v20 = vpop.f32.mrf.mxu1 }
 0xcb5   :  { %v3563_v23 = vadd.f32 %v1554_v12, %v1510_v20  ;;  %v3605_v20 = vadd.f32 %v3000_v19, %v1904_v14  ;;  %v3637_v19 = vld [vmem:[%s3709_s8] ss:$0 sm:$0xff] }
 0xcb6   :  { %v2755_v21 = vpop.f32.mrf.mxu1 }
 0xcb7   :  { %v1905_v21 = vadd.f32 %v3599_v10, %v3535_v18 }
 0xcb8   :  { %v1513_v26 = vpop.f32.mrf.mxu1 }
 0xcb9   :  { %v3565_v28 = vadd.f32 %v1557_v17, %v1513_v26  ;;  %v3001_v26 = vld [vmem:[#allocation2 + $0x8] sm:$0xff] }
 0xcba   :  { %v2756_v57 = vpop.f32.mrf.mxu1 }
 0xcbb   :  { %v3610_v57 = vadd.f32 %v3001_v26, %v1905_v21 }
 0xcbc   :  { %v1605_v29 = vpop.f32.mrf.mxu1 }
 0xcbd   :  { %v1612_v30 = vsel %vm567_vm2, %v1605_v29, -inf  ;;  %v1927_v16 = vmul.f32 %v3610_v57, %v3610_v57 }
 0xcbe   :  { %1613 = vmax.xlane.f32.xlu1 %v1612_v30  ;;  %v2769_v33 = vpop.f32.mrf.mxu1  ;;  %v2866_v30 = vld [vmem:[#allocation11 + $0x74] ss:$8 sps:$4 sm:$0xff]  }
 0xcc0   :  { %v1608_v62 = vpop.f32.mrf.mxu1 }
 0xcc1   :  { %v1615_v34 = vsel %vm567_vm2, %v1608_v62, -inf }
 0xcc2   :  { %1616 = vmax.xlane.f32.xlu0 %v1615_v34  ;;  %v2770_v54 = vpop.f32.mrf.mxu1 }
 0xd47   :  { %v1614_v31 = vpop.xlane.xlu1 %1613 }
 0xd48   :  { %v1618_v61 = vsub.f32 %v1605_v29, %v1614_v31  ;;  %v1926_v29 = vmul.f32 %v3605_v20, %v3605_v20 }
 0xd4a   :  { %v1620_v38 = vmul.f32 1.442695, %v1618_v61 }
 0xd4b   :  { %v1617_v52 = vpop.xlane.xlu0 %1616 }
 0xd4c   :  { %2960 = vpow2.f32 %v1620_v38  ;;  %v1619_v11 = vsub.f32 %v1608_v62, %v1617_v52 }
 0xd4e   :  { %v1622_v41 = vmul.f32 1.442695, %v1619_v11 }
 0xd50   :  { %2962 = vpow2.f32 %v1622_v41 }
 0xd59   :  { %v2961_v13 = vpop.eup %2960 }
 0xd5a   :  { %v1624_v42 = vsel %vm567_vm2, %v2961_v13, 0.0 }
 0xd5b   :  { %1625 = vadd.xlane.f32.xlu0 %v1624_v42 }
 0xd5d   :  { %v2963_v43 = vpop.eup %2962 }
 0xd5e   :  { %v1627_v37 = vsel %vm567_vm2, %v2963_v43, 0.0 }
 0xd5f   :  { %1628 = vadd.xlane.f32.xlu1 %v1627_v37 }
 0xd70   :  { %1731 = vrot.lane.b32.xlu1 %v3468_v32, %s3191_s29 }
 0xd71   :  { %1635 = vrot.lane.b32.xlu0 %v3357_v50, %s3184_s0 }
 0xd74   :  { %1729 = vrot.lane.b32.xlu1 %v3365_v58, %s3191_s29 }
 0xde4   :  { %v1626_v44 = vpop.xlane.xlu0 %1625 }
 0xde5   :  { %2964 = vrcp.f32 %v1626_v44 }
 0xde8   :  { %v1629_v46 = vpop.xlane.xlu1 %1628  ;;  %v1636_v47 = vpop.permute.xlu0 %1635 }
 0xde9   :  { %2966 = vrcp.f32 %v1629_v46  ;;  %2772 = vmatpush3.bf16.msra.mxu0 %v1636_v47 }
 0xdea   :  { %2785 = vmatprep.subr.bf16.mxu0 %v3188_v24 }
 0xdec   :  { %v1732_v55 = vpop.permute.xlu1 %1731 }
 0xded   :  { %v1737_v45 = vsel %vm519_vm1, %v1732_v55, 0 }
 0xdf0   :  { %v1730_v58 = vpop.permute.xlu1 %1729 }
 0xdf2   :  { %v2965_v35 = vpop.eup %2964 }
 0xdf3   :  { %v1632_v51 = vmul.f32 %v2965_v35, %v2961_v13 }
 0xdf6   :  { %v2967_v49 = vpop.eup %2966 }
 0xdf7   :  { %v1633_v53 = vmul.f32 %v2967_v49, %v2963_v43 }
 0xdf9   :  { %v1634_v32 = vpack.c.bf16 %v1633_v53, %v1632_v51 }
 0xdfb   :  { %2774 = vmatmul.mubr.msk.bf16.vlgmr.msra.gmra.mxu0 %vm567_vm2, %v1634_v32  ;;  %v2869_v32 = vld [vmem:[#allocation11 + $0x64] ss:$8 sps:$4 sm:$0xff]  }
 0xdfc   :  { %2786 = vmatpush3.bf16.xpose.msra.mxu0 %v1737_v45  ;;  %2787 = vmatprep.mubr.msk.bf16.mxu0 %vm3189_vm0, %v3188_v24 }
 0xdfd   :  { %2797 = vmatprep.subr.bf16.mxu0 %v3188_v24 }
 0xe03   :  { %2788 = vmatmul.mubr.msk.bf16.vlgmr.msra.gmra.mxu0 %vm519_vm1, %v1730_v58 }
 0xe04   :  { %2798 = vmatpush3.bf16.msra.mxu0 %v3484_v40  ;;  %2801 = vmatprep.mubr.msk.bf16.mxu0 %vm3189_vm0, %v3188_v24 }
 0xe05   :  { %2799 = vmatprep.subr.bf16.mxu0 %v3188_v24 }
 0xe08   :  { %2800 = vmatpush3.bf16.msra.mxu0 %v3508_v48 }
 0xebb   :  { %v1675_v36 = vpop.f32.mrf.mxu0 }
 0xebd   :  { %v2775_v39 = vpop.f32.mrf.mxu0 }
 0xebf   :  { %v1678_v60 = vpop.f32.mrf.mxu0 }
 0xec0   :  { %v1682_v63 = vpack.c.bf16 %v1678_v60, %v1675_v36  ;;  %v2867_v36 = vld [vmem:[#allocation11 + $0x60] ss:$8 sps:$4 sm:$0xff]   ;;  %v2872_v60 = vld [vmem:[#allocation11 + $0x54] ss:$8 sps:$4 sm:$0xff]  }
 0xec1   :  { %v2776_v0 = vpop.f32.mrf.mxu0 }
 0xec2   :  { %2782 = vmatmul.mubr.msk.bf16.vlgmr.msra.gmra.mxu1 %vm519_vm1, %v1682_v63  ;;  %v2870_v63 = vld [vmem:[#allocation11 + $0x50] ss:$8 sps:$4 sm:$0xff]   ;;  %v2875_v0 = vld [vmem:[#allocation11 + $0x44] ss:$8 sps:$4 sm:$0xff]  }
 0xec3   :  { %v1773_v1 = vpop.f32.mrf.mxu0  ;;  %2793 = vmatprep.mubr.msk.bf16.mxu1 %vm3189_vm0, %v3188_v24 }
 0xec4   :  { %v1780_v40 = vsel %vm567_vm2, %v1773_v1, -inf }
 0xec5   :  { %1781 = vmax.xlane.f32.xlu1 %v1780_v40  ;;  %v2789_v2 = vpop.f32.mrf.mxu0  ;;  %v2878_v40 = vld [vmem:[#allocation11 + $0x34] ss:$8 sps:$4 sm:$0xff]  }
 0xec6   :  { %v2876_v2 = vld [vmem:[#allocation11 + $0x30] ss:$8 sps:$4 sm:$0xff]  }
 0xec7   :  { %v1776_v3 = vpop.f32.mrf.mxu0 }
 0xec8   :  { %v1783_v4 = vsel %vm567_vm2, %v1776_v3, -inf }
 0xec9   :  { %1784 = vmax.xlane.f32.xlu0 %v1783_v4  ;;  %v2790_v48 = vpop.f32.mrf.mxu0 }
 0xed6   :  { %1803 = vrot.lane.b32.xlu1 %v3357_v50, %s3191_s29 }
 0xf4e   :  { %v1782_v5 = vpop.xlane.xlu1 %1781 }
 0xf4f   :  { %v1786_v56 = vsub.f32 %v1773_v1, %v1782_v5  ;;  %v2873_v1 = vld [vmem:[#allocation11 + $0x40] ss:$8 sps:$4 sm:$0xff]  }
 0xf51   :  { %v1788_v6 = vmul.f32 1.442695, %v1786_v56  ;;  %v2879_v56 = vld [vmem:[#allocation11 + $0x20] ss:$8 sps:$4 sm:$0xff]  }
 0xf52   :  { %v1804_v7 = vpop.permute.xlu1 %1803  ;;  %v1785_v8 = vpop.xlane.xlu0 %1784 }
 0xf53   :  { %2968 = vpow2.f32 %v1788_v6  ;;  %v1787_v9 = vsub.f32 %v1776_v3, %v1785_v8  ;;  %2792 = vmatpush3.bf16.msra.mxu1 %v1804_v7  ;;  %v2881_v3 = vld [vmem:[#allocation11 + $0x24] ss:$8 sps:$4 sm:$0xff]   ;;  %v2884_v7 = vld [vmem:[#allocation11 + $0x14] ss:$8 sps:$4 sm:$0xff]  }
 0xf54   :  { %2096 = vmatprep.subr.bf16.mxu1 %v2866_v30 }
 0xf55   :  { %v1790_v24 = vmul.f32 1.442695, %v1787_v9 }
 0xf57   :  { %2970 = vpow2.f32 %v1790_v24  ;;  %v2882_v24 = vld [vmem:[#allocation11 + $0x10] ss:$8 sps:$4 sm:$0xff]  }
 0xf60   :  { %v2969_v59 = vpop.eup %2968 }
 0xf61   :  { %v1792_v12 = vsel %vm567_vm2, %v2969_v59, 0.0 }
 0xf62   :  { %1793 = vadd.xlane.f32.xlu0 %v1792_v12  ;;  %v2887_v12 = vld [vmem:[#allocation11 + $0x4] ss:$8 sps:$4 sm:$0xff]  }
 0xf64   :  { %v2971_v50 = vpop.eup %2970 }
 0xf65   :  { %v1795_v17 = vsel %vm567_vm2, %v2971_v50, 0.0 }
 0xf66   :  { %1796 = vadd.xlane.f32.xlu0 %v1795_v17  ;;  %v2885_v17 = vld [vmem:[#allocation11] ss:$8 sps:$4 sm:$0xff]  }
 0xf6a   :  { %1914 = vadd.xlane.f32.xlu0 %v3605_v20 }
 0xf6e   :  { %1916 = vadd.xlane.f32.xlu0 %v3610_v57 }
 0xf72   :  { %1930 = vadd.xlane.f32.xlu0 %v1926_v29 }
 0xf76   :  { %1932 = vadd.xlane.f32.xlu0 %v1927_v16  ;;  %v2888_v16 = vld [vmem:[#allocation13 + $0x78] sm:$0xff]  }
 0xf77   :  { %2597 = vmatprep.subr.bf16.mxu0 %v2888_v16 }
 0xf82   :  { %v1720_v33 = vpop.f32.mrf.mxu1 }
 0xf83   :  { %v3618_v18 = vadd.f32 %v1720_v33, %v3563_v23 }
 0xf84   :  { %v2783_v62 = vpop.f32.mrf.mxu1 }
 0xf86   :  { %v1723_v34 = vpop.f32.mrf.mxu1 }
 0xf87   :  { %v3621_v54 = vadd.f32 %v1723_v34, %v3565_v28  ;;  %v2864_v28 = vld [vmem:[#allocation11 + $0x70] ss:$8 sps:$4 sm:$0xff]  }
 0xf88   :  { %v2784_v31 = vpop.f32.mrf.mxu1  ;;  %v2889_v34 = vld [vmem:[#allocation13 + $0x38] sm:$0xff]  }
 0xfeb   :  { %v1794_v61 = vpop.xlane.xlu0 %1793 }
 0xfec   :  { %2972 = vrcp.f32 %v1794_v61  ;;  %v2890_v61 = vld [vmem:[#allocation13 + $0x70] sm:$0xff]  }
 0xfef   :  { %v1797_v38 = vpop.xlane.xlu0 %1796 }
 0xff0   :  { %2974 = vrcp.f32 %v1797_v38 }
 0xff3   :  { %v1915_v52 = vpop.xlane.xlu0 %1914 }
 0xff4   :  { %v1922_v41 = vmul.f32 0.0078125, %v1915_v52  ;;  %v2891_v52 = vld [vmem:[#allocation13 + $0x30] sm:$0xff]  }
 0xff6   :  { %v1942_v43 = vmul.f32 %v1922_v41, %v1922_v41  ;;  %v1950_v6 = vsub.f32 %v3605_v20, %v1922_v41  ;;  %v2893_v41 = vld [vmem:[#allocation13 + $0x28] sm:$0xff]  }
 0xff7   :  { %v1917_v11 = vpop.xlane.xlu0 %1916 }
 0xff8   :  { %v1923_v37 = vmul.f32 0.0078125, %v1917_v11  ;;  %v2892_v11 = vld [vmem:[#allocation13 + $0x68] sm:$0xff]  }
 0xff9   :  { %v2973_v13 = vpop.eup %2972 }
 0xffa   :  { %v1800_v47 = vmul.f32 %v2973_v13, %v2969_v59  ;;  %v1943_v51 = vmul.f32 %v1923_v37, %v1923_v37  ;;  %v1951_v48 = vsub.f32 %v3610_v57, %v1923_v37  ;;  %v3630_v59 = vld [vmem:[%s3708_s7] ss:$0 sm:$0xff]  ;;  %v2894_v13 = vld [vmem:[#allocation13 + $0x60] sm:$0xff]   ;;  %v2898_v37 = vld [vmem:[#allocation13 + $0x50] sm:$0xff]  }
 0xffb   :  { %v1931_v42 = vpop.xlane.xlu0 %1930 }
 0xffc   :  { %v1938_v44 = vmul.f32 0.0078125, %v1931_v42  ;;  %v2896_v42 = vld [vmem:[#allocation13 + $0x58] sm:$0xff]  }
 0xffd   :  { %v2975_v23 = vpop.eup %2974 }
 0xffe   :  { %v1946_v46 = vsub.f32 %v1938_v44, %v1942_v43  ;;  %v1801_v35 = vmul.f32 %v2975_v23, %v2971_v50  ;;  %v2897_v43 = vld [vmem:[#allocation13 + $0x18] sm:$0xff]   ;;  %v2899_v44 = vld [vmem:[#allocation13 + $0x10] sm:$0xff]   ;;  %v2900_v23 = vld [vmem:[#allocation13 + $0x48] sm:$0xff]  }
 0xfff   :  { %v1933_v49 = vpop.xlane.xlu0 %1932 }
0x1000   :  { %v1939_v53 = vmul.f32 0.0078125, %v1933_v49  ;;  %v1802_v55 = vpack.c.bf16 %v1801_v35, %v1800_v47  ;;  %v1954_v45 = vadd.f32 1e-05, %v1946_v46  ;;  %v2004_v46 = vld [vmem:[%s3711_s10] sm:$0x3]  ;;  %v2901_v47 = vld [vmem:[#allocation13 + $0x8] sm:$0xff]  }
0x1001   :  { %v3648_v35 = vrot.slane %v2004_v46, %v254_v25  ;;  %v2902_v49 = vld [vmem:[#allocation13 + $0x40] sm:$0xff]  }
0x1002   :  { %v1947_v58 = vsub.f32 %v1939_v53, %v1943_v51  ;;  %2794 = vmatmul.mubr.msk.bf16.vlgmr.msra.gmra.mxu1 %vm567_vm2, %v1802_v55  ;;  %2976 = vrsqrt.f32 %v1954_v45  ;;  %v2903_v53 = vld [vmem:[#allocation13] sm:$0xff]  }
0x1003   :  { %2097 = vmatpush1.bf16.msra.mxu1 %v2864_v28  ;;  %2128 = vmatprep.mubr.bf16.mxu1 %v3187_v15  ;;  %v3652_v28 = vrot.slane %v2004_v46, %v258_v27  ;;  %v3002_v46 = vld [vmem:[#allocation2 + $0x10] sm:$0xff] }
0x1004   :  { %v1955_v39 = vadd.f32 1e-05, %v1947_v58  ;;  %2098 = vmatprep.subr.bf16.mxu1 %v2869_v32 }
0x1006   :  { %2978 = vrsqrt.f32 %v1955_v39 }
0x1007   :  { %2099 = vmatpush1.bf16.msra.mxu1 %v2867_v36 }
0x1008   :  { %2100 = vmatprep.subr.bf16.mxu1 %v2872_v60 }
0x100b   :  { %2101 = vmatpush1.bf16.msra.mxu1 %v2870_v63 }
0x100c   :  { %2102 = vmatprep.subr.bf16.mxu1 %v2875_v0 }
0x100f   :  { %2103 = vmatpush1.bf16.msra.mxu1 %v2873_v1  ;;  %v2977_v4 = vpop.eup %2976 }
0x1010   :  { %2104 = vmatprep.subr.bf16.mxu1 %v2878_v40  ;;  %v1962_v9 = vmul.f32 %v2977_v4, %v1950_v6 }
0x1012   :  { %v1972_v14 = vmul.f32 %v3630_v59, %v1962_v9 }
0x1013   :  { %v2979_v5 = vpop.eup %2978  ;;  %2105 = vmatpush1.bf16.msra.mxu1 %v2876_v2 }
0x1014   :  { %2106 = vmatprep.subr.bf16.mxu1 %v2881_v3  ;;  %v1963_v8 = vmul.f32 %v2979_v5, %v1951_v48  ;;  %v1982_v26 = vadd.f32 %v3637_v19, %v1972_v14 }
0x1016   :  { %v1973_v50 = vmul.f32 %v3630_v59, %v1963_v8 }
0x1017   :  { %2107 = vmatpush1.bf16.msra.mxu1 %v2879_v56 }
0x1018   :  { %2108 = vmatprep.subr.bf16.mxu1 %v2884_v7  ;;  %v1983_v21 = vadd.f32 %v3637_v19, %v1973_v50 }
0x101a   :  { %v1986_v29 = vpack.c.bf16 %v1983_v21, %v1982_v26 }
0x101b   :  { %2109 = vmatpush1.bf16.msra.mxu1 %v2882_v24 }
0x101c   :  { %2110 = vmatprep.subr.bf16.mxu1 %v2887_v12 }
0x101f   :  { %2111 = vmatpush1.bf16.msra.mxu1 %v2885_v17 }
0x1022   :  { %2129 = vmatmul.mubr.bf16.vlgmr.msra.gmra.mxu1 %v1986_v29 }
0x1023   :  { %2138 = vmatprep.mubr.bf16.mxu1 %v3187_v15  ;;  %v2895_v15 = vld [vmem:[#allocation13 + $0x20] sm:$0xff]  }
0x10c2   :  { %v1843_v30 = vpop.f32.mrf.mxu1 }
0x10c4   :  { %v2795_v33 = vpop.f32.mrf.mxu1 }
0x10c6   :  { %v1846_v62 = vpop.f32.mrf.mxu1 }
0x10c7   :  { %v1850_v31 = vpack.c.bf16 %v1846_v62, %v1843_v30 }
0x10c8   :  { %v2796_v38 = vpop.f32.mrf.mxu1 }
0x10c9   :  { %2802 = vmatmul.mubr.msk.bf16.vlgmr.msra.gmra.mxu0 %vm519_vm1, %v1850_v31 }
0x10ca   :  { %2598 = vmatpush3.bf16.msra.mxu0 %v2889_v34 }
0x10cb   :  { %2599 = vmatprep.subr.bf16.mxu0 %v2890_v61 }
0x10ce   :  { %2600 = vmatpush3.bf16.msra.mxu0 %v2891_v52 }
0x10cf   :  { %2601 = vmatprep.subr.bf16.mxu0 %v2892_v11 }
0x10d2   :  { %2602 = vmatpush3.bf16.msra.mxu0 %v2893_v41 }
0x10d3   :  { %2603 = vmatprep.subr.bf16.mxu0 %v2894_v13 }
0x10d6   :  { %2604 = vmatpush3.bf16.msra.mxu0 %v2895_v15 }
0x10d7   :  { %2605 = vmatprep.subr.bf16.mxu0 %v2896_v42 }
0x10da   :  { %2606 = vmatpush3.bf16.msra.mxu0 %v2897_v43 }
0x10db   :  { %2607 = vmatprep.subr.bf16.mxu0 %v2898_v37 }
0x10de   :  { %2608 = vmatpush3.bf16.msra.mxu0 %v2899_v44 }
0x10df   :  { %2609 = vmatprep.subr.bf16.mxu0 %v2900_v23 }
0x10e2   :  { %v2130_v51 = vpop.f32.mrf.mxu1  ;;  %2610 = vmatpush3.bf16.msra.mxu0 %v2901_v47 }
0x10e3   :  { %v2131_v55 = vadd.f32 %v2130_v51, %v3648_v35  ;;  %2611 = vmatprep.subr.bf16.mxu0 %v2902_v49 }
0x10e4   :  { %v2132_v32 = vpop.f32.mrf.mxu1 }
0x10e5   :  { %v2157_v45 = vmul.f32 0.044715, %v2131_v55  ;;  %v2133_v58 = vadd.f32 %v2132_v32, %v3652_v28  ;;  %v2149_v61 = vmul.f32 0.5, %v2131_v55  ;;  %v3003_v32 = vld [vmem:[#allocation2 + $0x18] sm:$0xff] }
0x10e6   :  { %v2134_v36 = vpop.f32.mrf.mxu1  ;;  %2612 = vmatpush3.bf16.msra.mxu0 %v2903_v53 }
0x10e7   :  { %v2165_v25 = vmul.f32 %v2157_v45, %v2131_v55  ;;  %v2158_v39 = vmul.f32 0.044715, %v2133_v58  ;;  %v2135_v60 = vadd.f32 %v2134_v36, %v3648_v35  ;;  %v2150_v62 = vmul.f32 0.5, %v2133_v58 }
0x10e8   :  { %v2136_v63 = vpop.f32.mrf.mxu1 }
0x10e9   :  { %v2173_v22 = vmul.f32 %v2165_v25, %v2131_v55  ;;  %v2166_v27 = vmul.f32 %v2158_v39, %v2133_v58  ;;  %v2159_v0 = vmul.f32 0.044715, %v2135_v60  ;;  %v2137_v1 = vadd.f32 %v2136_v63, %v3652_v28 }
0x10ea   :  { %v2151_v30 = vmul.f32 0.5, %v2135_v60 }
0x10eb   :  { %v2181_v40 = vadd.f32 %v2173_v22, %v2131_v55  ;;  %v2174_v2 = vmul.f32 %v2166_v27, %v2133_v58  ;;  %v2167_v3 = vmul.f32 %v2159_v0, %v2135_v60  ;;  %v2160_v4 = vmul.f32 0.044715, %v2137_v1 }
0x10ec   :  { %v2152_v34 = vmul.f32 0.5, %v2137_v1 }
0x10ed   :  { %v2175_v48 = vmul.f32 %v2167_v3, %v2135_v60  ;;  %v2168_v5 = vmul.f32 %v2160_v4, %v2137_v1  ;;  %v2182_v56 = vadd.f32 %v2174_v2, %v2133_v58  ;;  %v2189_v6 = vmul.f32 0.7978846, %v2181_v40 }
0x10ef   :  { %v2183_v7 = vadd.f32 %v2175_v48, %v2135_v60  ;;  %v2176_v8 = vmul.f32 %v2168_v5, %v2137_v1  ;;  %v2190_v9 = vmul.f32 0.7978846, %v2182_v56 }
0x10f1   :  { %v2191_v24 = vmul.f32 0.7978846, %v2183_v7  ;;  %v2184_v12 = vadd.f32 %v2176_v8, %v2137_v1  ;;  %2980 = vtanh.f32 %v2190_v9 }
0x10f2   :  { %2982 = vtanh.f32 %v2189_v6 }
0x10f3   :  { %2984 = vtanh.f32 %v2191_v24  ;;  %v2192_v50 = vmul.f32 0.7978846, %v2184_v12 }
0x10f5   :  { %2986 = vtanh.f32 %v2192_v50 }
0x10fe   :  { %v2981_v14 = vpop.eup %2980 }
0x10ff   :  { %v2983_v17 = vpop.eup %2982  ;;  %v2206_v26 = vadd.f32 1.0, %v2981_v14 }
0x1100   :  { %v2985_v21 = vpop.eup %2984  ;;  %v2205_v33 = vadd.f32 1.0, %v2983_v17 }
0x1101   :  { %v2207_v29 = vadd.f32 1.0, %v2985_v21  ;;  %v2214_v52 = vmul.f32 %v2206_v26, %v2150_v62 }
0x1102   :  { %v2987_v16 = vpop.eup %2986  ;;  %v2213_v41 = vmul.f32 %v2205_v33, %v2149_v61 }
0x1103   :  { %v2208_v31 = vadd.f32 1.0, %v2987_v16  ;;  %v2215_v38 = vmul.f32 %v2207_v29, %v2151_v30 }
0x1105   :  { %v2216_v11 = vmul.f32 %v2208_v31, %v2152_v34  ;;  %v2221_v15 = vpack.c.bf16 %v2215_v38, %v2213_v41 }
0x1107   :  { %v2222_v13 = vpack.c.bf16 %v2216_v11, %v2214_v52 }
0x1109   :  { %2392 = vmatprep.mubr.bf16.mxu0 %v2222_v13 }
0x110a   :  { %2393 = vmatmul.mubr.bf16.vlgmr.msra.gmra.mxu0 %v2221_v15 }
0x1189   :  { %v1888_v42 = vpop.f32.mrf.mxu0 }
0x118a   :  { %v1895_v43 = vadd.f32 %v1888_v42, %v3618_v18 }
0x118b   :  { %v2803_v37 = vpop.f32.mrf.mxu0 }
0x118c   :  { %v1906_v44 = vadd.f32 %v3599_v10, %v1895_v43 }
0x118d   :  { %v1891_v23 = vpop.f32.mrf.mxu0 }
0x118e   :  { %v3660_v47 = vadd.f32 %v3002_v46, %v1906_v44  ;;  %v1896_v49 = vadd.f32 %v1891_v23, %v3621_v54 }
0x118f   :  { %v2804_v51 = vpop.f32.mrf.mxu0 }
0x1190   :  { %v1907_v53 = vadd.f32 %v3599_v10, %v1896_v49  ;;  %1918 = vadd.xlane.f32.xlu1 %v3660_v47  ;;  %v1928_v55 = vmul.f32 %v3660_v47, %v3660_v47  ;;  %v3675_v10 = vld [vmem:[%s3713_s12] ss:$0 sm:$0xff]  ;;  %s3192_s12 = smov [#allocation14]  }
0x1191   :  { %s2422_s18 = sshll.u32 %s3192_s12, 4  ;;  %s2423_s18 = int_to_ptr.vmem [resolvable:$true] %s2422_s18 }
0x1192   :  { %1934 = vadd.xlane.f32.xlu0 %v1928_v55  ;;  %v3667_v18 = vadd.f32 %v3003_v32, %v1907_v53  ;;  %s3144_s19 = scalar_lea.vmem %s2423_s18, 512  ;;  %p3149_p8 = scmp.lt.s32.totalorder %s2423_s18, %s2423_s18 }
0x1193   :  { %p3145_p7 = scmp.ne.s32.totalorder %s2423_s18, %s3144_s19  ;;  %p3150_p9 = scmp.lt.s32.totalorder %s3144_s19, %s3144_s19 }
0x1194   :  { %v1929_v45 = vmul.f32 %v3667_v18, %v3667_v18 }
0x1195   :  { %p3151_p10 = por %p3150_p9, %p3149_p8 }
0x1196   :  { %1920 = vadd.xlane.f32.xlu0 %v3667_v18 }
0x1197   :  { %p3152_p11 = pnand %p3151_p10, %p3145_p7 }
0x119a   :  { %1936 = vadd.xlane.f32.xlu0 %v1929_v45 }
0x11ca   :  { %v2613_v58 = vpop.f32.mrf.mxu0 }
0x11cc   :  { %v2614_v54 = vpop.f32.mrf.mxu0 }
0x11cd   :  { %v2615_v36 = vadd.f32 %v2614_v54, %v2613_v58 }
0x11ce   :  { %v2616_v25 = vpop.f32.mrf.mxu0 }
0x11cf   :  { %v2395_v39 = vadd.f32 %v2615_v36, %v3675_v10 }
0x11d0   :  { %v2617_v60 = vpop.f32.mrf.mxu0 }
0x11d1   :  { %v2409_v63 = vadd.f32 %v2395_v39, %v3605_v20  ;;  %v2618_v22 = vadd.f32 %v2617_v60, %v2616_v25 }
0x11d3   :  { %2413 = vst [vmem:[#allocation14] sm:$0xff] %v2409_v63  ;;  %v2398_v27 = vadd.f32 %v2618_v22, %v3675_v10 }
0x11d5   :  { %v2410_v0 = vadd.f32 %v2398_v27, %v3610_v57 }
0x11d7   :  { %2414 = vst [vmem:[#allocation14 + $0x8] sm:$0xff] %v2410_v0 }
0x1219   :  { %v1919_v1 = vpop.xlane.xlu1 %1918 }
0x121a   :  { %v1924_v40 = vmul.f32 0.0078125, %v1919_v1 }
0x121b   :  { %v1935_v2 = vpop.xlane.xlu0 %1934 }
0x121c   :  { %v1944_v3 = vmul.f32 %v1924_v40, %v1924_v40  ;;  %v1940_v4 = vmul.f32 0.0078125, %v1935_v2  ;;  %v1952_v57 = vsub.f32 %v3660_v47, %v1924_v40 }
0x121e   :  { %v1948_v48 = vsub.f32 %v1940_v4, %v1944_v3 }
0x121f   :  { %v1921_v5 = vpop.xlane.xlu0 %1920 }
0x1220   :  { %v1956_v56 = vadd.f32 1e-05, %v1948_v48  ;;  %v1925_v6 = vmul.f32 0.0078125, %v1921_v5 }
0x1222   :  { %2988 = vrsqrt.f32 %v1956_v56  ;;  %v1945_v8 = vmul.f32 %v1925_v6, %v1925_v6  ;;  %v1953_v14 = vsub.f32 %v3667_v18, %v1925_v6 }
0x1223   :  { %v1937_v7 = vpop.xlane.xlu0 %1936 }
0x1224   :  { %v1941_v20 = vmul.f32 0.0078125, %v1937_v7 }
0x1226   :  { %v1949_v9 = vsub.f32 %v1941_v20, %v1945_v8 }
0x1228   :  { %v1957_v24 = vadd.f32 1e-05, %v1949_v9 }
0x122a   :  { %2990 = vrsqrt.f32 %v1957_v24 }
0x122f   :  { %v2989_v12 = vpop.eup %2988 }
0x1230   :  { %v1964_v50 = vmul.f32 %v2989_v12, %v1952_v57 }
0x1232   :  { %v1974_v26 = vmul.f32 %v3630_v59, %v1964_v50 }
0x1234   :  { %v1984_v16 = vadd.f32 %v3637_v19, %v1974_v26 }
0x1237   :  { %v2991_v17 = vpop.eup %2990 }
0x1238   :  { %v1965_v21 = vmul.f32 %v2991_v17, %v1953_v14 }
0x123a   :  { %v1975_v29 = vmul.f32 %v3630_v59, %v1965_v21 }
0x123c   :  { %v1985_v30 = vadd.f32 %v3637_v19, %v1975_v29 }
0x123e   :  { %v1987_v33 = vpack.c.bf16 %v1985_v30, %v1984_v16 }
0x1240   :  { %2139 = vmatmul.mubr.bf16.gmra.mxu1 %v1987_v33 }
0x1300   :  { %v2140_v62 = vpop.f32.mrf.mxu1 }
0x1301   :  { %v2141_v34 = vadd.f32 %v2140_v62, %v3648_v35 }
0x1302   :  { %v2142_v31 = vpop.f32.mrf.mxu1 }
0x1303   :  { %v2161_v61 = vmul.f32 0.044715, %v2141_v34  ;;  %v2143_v38 = vadd.f32 %v2142_v31, %v3652_v28  ;;  %v2153_v3 = vmul.f32 0.5, %v2141_v34 }
0x1304   :  { %v2144_v52 = vpop.f32.mrf.mxu1 }
0x1305   :  { %v2169_v11 = vmul.f32 %v2161_v61, %v2141_v34  ;;  %v2162_v41 = vmul.f32 0.044715, %v2143_v38  ;;  %v2145_v13 = vadd.f32 %v2144_v52, %v3648_v35  ;;  %v2154_v1 = vmul.f32 0.5, %v2143_v38 }
0x1306   :  { %v2146_v15 = vpop.f32.mrf.mxu1 }
0x1307   :  { %v2177_v59 = vmul.f32 %v2169_v11, %v2141_v34  ;;  %v2170_v42 = vmul.f32 %v2162_v41, %v2143_v38  ;;  %v2163_v43 = vmul.f32 0.044715, %v2145_v13  ;;  %v2147_v19 = vadd.f32 %v2146_v15, %v3652_v28 }
0x1308   :  { %v2155_v27 = vmul.f32 0.5, %v2145_v13 }
0x1309   :  { %v2178_v37 = vmul.f32 %v2170_v42, %v2143_v38  ;;  %v2171_v44 = vmul.f32 %v2163_v43, %v2145_v13  ;;  %v2164_v23 = vmul.f32 0.044715, %v2147_v19  ;;  %v2185_v46 = vadd.f32 %v2177_v59, %v2141_v34 }
0x130a   :  { %v2156_v40 = vmul.f32 0.5, %v2147_v19 }
0x130b   :  { %v2179_v49 = vmul.f32 %v2171_v44, %v2145_v13  ;;  %v2172_v51 = vmul.f32 %v2164_v23, %v2147_v19  ;;  %v2186_v53 = vadd.f32 %v2178_v37, %v2143_v38  ;;  %v2193_v55 = vmul.f32 0.7978846, %v2185_v46 }
0x130d   :  { %v2180_v32 = vmul.f32 %v2172_v51, %v2147_v19  ;;  %v2194_v45 = vmul.f32 0.7978846, %v2186_v53  ;;  %v2187_v58 = vadd.f32 %v2179_v49, %v2145_v13 }
0x130f   :  { %v2188_v54 = vadd.f32 %v2180_v32, %v2147_v19  ;;  %2992 = vtanh.f32 %v2194_v45  ;;  %v2195_v35 = vmul.f32 0.7978846, %v2187_v58 }
0x1310   :  { %2994 = vtanh.f32 %v2193_v55 }
0x1311   :  { %v2196_v36 = vmul.f32 0.7978846, %v2188_v54  ;;  %2996 = vtanh.f32 %v2195_v35 }
0x1313   :  { %2998 = vtanh.f32 %v2196_v36 }
0x131c   :  { %v2993_v25 = vpop.eup %2992 }
0x131d   :  { %v2995_v28 = vpop.eup %2994  ;;  %v2210_v60 = vadd.f32 1.0, %v2993_v25 }
0x131e   :  { %v2997_v39 = vpop.eup %2996  ;;  %v2209_v0 = vadd.f32 1.0, %v2995_v28 }
0x131f   :  { %v2211_v63 = vadd.f32 1.0, %v2997_v39  ;;  %v2218_v48 = vmul.f32 %v2210_v60, %v2154_v1 }
0x1320   :  { %v2999_v22 = vpop.eup %2998  ;;  %v2217_v56 = vmul.f32 %v2209_v0, %v2153_v3 }
0x1321   :  { %v2212_v2 = vadd.f32 1.0, %v2999_v22  ;;  %v2219_v4 = vmul.f32 %v2211_v63, %v2155_v27 }
0x1323   :  { %v2220_v5 = vmul.f32 %v2212_v2, %v2156_v40  ;;  %v2223_v7 = vpack.c.bf16 %v2219_v4, %v2217_v56 }
0x1325   :  { %v2224_v6 = vpack.c.bf16 %v2220_v5, %v2218_v48 }
0x1327   :  { %2400 = vmatprep.mubr.bf16.mxu0 %v2224_v6 }
0x1328   :  { %2401 = vmatmul.mubr.bf16.gmra.mxu0 %v2223_v7 }
0x13e8   :  { %v2619_v8 = vpop.f32.mrf.mxu0 }
0x13ea   :  { %v2620_v20 = vpop.f32.mrf.mxu0 }
0x13eb   :  { %v2621_v9 = vadd.f32 %v2620_v20, %v2619_v8 }
0x13ec   :  { %v2622_v24 = vpop.f32.mrf.mxu0 }
0x13ed   :  { %v2403_v12 = vadd.f32 %v2621_v9, %v3675_v10 }
0x13ee   :  { %v2623_v57 = vpop.f32.mrf.mxu0 }
0x13ef   :  { %v2411_v50 = vadd.f32 %v2403_v12, %v3660_v47  ;;  %v2624_v14 = vadd.f32 %v2623_v57, %v2622_v24 }
0x13f1   :  { %2415 = vst [vmem:[#allocation14 + $0x10] sm:$0xff] %v2411_v50  ;;  %v2406_v17 = vadd.f32 %v2624_v14, %v3675_v10 }
0x13f3   :  { %v2412_v21 = vadd.f32 %v2406_v17, %v3667_v18 }
0x13f5   :  { %2416 = vst [vmem:[#allocation14 + $0x18] sm:$0xff] %v2412_v21 }
0x13f6   :  { %3155 = shalt.err (!%p3152_p11)
}
0x13f7   :  { %2428 = dma.vmem_to_hbm [thread:$0]  %s2423_s18, 512, %s3714_s13, [#allocation4], %s3180_s25, %s3180_s25, %s3181_s26  }
0x13f8   :  { %3172 = dma.done.wait [#allocation4], 512  }
0x13f9   :  { %3173 = vsyncadd [#allocation4], 4294966784 }
0x13fa   :  { %2432 = vsyncpa [#allocation3], 1 }
0x13fb   :  { %2433 = vsyncpa [#allocation6], 1 }
0x13fc   :  { %2434 = vsyncpa [#allocation9], 1 }
0x13fd   :  { %2435 = vsyncpa [#allocation12], 1 }
0x13fe   :  { %2436 = vsyncpa [#allocation4], 1 }

</bundles_post_ra>
